<compile_context>
chip_gen: v5e
topology: v5e:2x2
jax: 0.10.0
libtpu: 0.0.40
codegen_flags: <defaults>
</compile_context>

<pallas_src>
import functools

import jax
import jax.numpy as jnp
import numpy as np
from jax.experimental import pallas as pl
from jax.experimental.pallas import tpu as pltpu


def _round_up8(c):
    return max(8, ((c + 7) // 8) * 8)


def _tap_offsets_and_masks(H, W):
    """Flat-index offsets and 0/1 validity masks for the 9 taps of a 3x3 'SAME' conv.

    patch_t[c, y*W + x] = act[c, (y+dy-1)*W + (x+dx-1)]  if in-bounds else 0,
    with t = dy*3 + dx.
    """
    offs = []
    masks = np.ones((9, H, W), np.float32)
    for dy in range(3):
        for dx in range(3):
            t = dy * 3 + dx
            offs.append((dy - 1) * W + (dx - 1))
            if dy == 0:
                masks[t, 0, :] = 0.0
            if dy == 2:
                masks[t, H - 1, :] = 0.0
            if dx == 0:
                masks[t, :, 0] = 0.0
            if dx == 2:
                masks[t, :, W - 1] = 0.0
    return offs, masks.reshape(9, H * W)


def _fused_fcd_kernel(x_ref, m_ref, w1, b1, w2, b2, w3, b3, w4, b4,
                      o_ref, patch_ref, *, H, W, tap_offs):
    # x_ref:     (1, C0, H*W)        channel-major input for one batch element
    # m_ref:     (9, H*W)            per-tap validity masks (0/1, f32)
    # wL:        (CoutP_L, 9*CinP_L) im2col weights (tap-major K), zero padded
    # bL:        (CoutP_L, 1)        bias, zero padded
    # o_ref:     (1, COUT_PAD, H*W)  lane-dense output (channel 0 is the result)
    # patch_ref: (9*CinP_0, H*W)     VMEM im2col scratch (reused by all layers)
    HW = H * W

    def shift_lanes(a, off):
        # out[:, j] = a[:, j + off]; positions outside [0, HW) are zero-filled
        # (every out-of-image read is additionally killed by the tap mask).
        if off == 0:
            return a
        pad = jnp.zeros((a.shape[0], abs(off)), a.dtype)
        if off > 0:
            return jnp.concatenate([a[:, off:], pad], axis=1)
        return jnp.concatenate([pad, a[:, :HW + off]], axis=1)

    act = x_ref[0]                     # (Cin0, HW), lane-dense
    layers = ((w1, b1, True), (w2, b2, True), (w3, b3, True), (w4, b4, False))
    for w_ref, b_ref, apply_lrelu in layers:
        cout_p, k = w_ref.shape
        cin_p = k // 9
        assert act.shape[0] == cin_p   # trace-time shape sanity
        # im2col: 9 shifted+masked copies of act -> (9*cin_p, HW) patch matrix.
        for t in range(9):
            p = shift_lanes(act, tap_offs[t]) * m_ref[t:t + 1, :]
            patch_ref[t * cin_p:(t + 1) * cin_p, :] = p
        # One lane-dense MXU matmul per layer: (cout_p, 9*cin_p) @ (9*cin_p, HW).
        acc = jnp.dot(w_ref[...], patch_ref[0:9 * cin_p, :],
                      preferred_element_type=jnp.float32)
        acc = acc + b_ref[...]                         # (cout_p, 1) broadcast
        if apply_lrelu:
            acc = jnp.where(acc >= 0, acc, 0.2 * acc)  # LeakyReLU(0.2)
        act = acc
    o_ref[0] = act.astype(o_ref.dtype)                 # (COUT_PAD, HW)


def _pack_layer_weights(w_hwio, bias, cin_p, cout_p):
    """(3,3,Cin,Cout) HWIO + (Cout,) bias -> (Cout_p, 9*Cin_p) im2col weight
    (tap-major K: k = tap*Cin_p + ci) and (Cout_p, 1) bias, zero padded so
    every channel count is a multiple of 8."""
    _, _, cin, cout = w_hwio.shape
    w_pad = jnp.zeros((3, 3, cin_p, cout_p), w_hwio.dtype)
    w_pad = w_pad.at[:, :, :cin, :cout].set(w_hwio)
    w_mat = jnp.transpose(w_pad.reshape(9, cin_p, cout_p), (2, 0, 1))
    w_mat = w_mat.reshape(cout_p, 9 * cin_p)
    b_pad = jnp.zeros((cout_p, 1), bias.dtype).at[:cout, 0].set(bias)
    return w_mat, b_pad


def init_fc_discriminator_params(key, num_classes):
    """Deterministic init; layer shapes follow FCDiscriminator.__init__ (HWIO)."""
    assert num_classes % 8 == 0 and num_classes >= 8, (
        "num_classes must be a positive multiple of 8 (nc -> nc/2 -> nc/4 -> nc/8 -> 1)")
    chans = [num_classes, num_classes // 2, num_classes // 4,
             num_classes // 8, 1]
    params = []
    for li in range(4):
        cin, cout = chans[li], chans[li + 1]
        key, kw, kb = jax.random.split(key, 3)
        fan_in = cin * 3 * 3
        bound = 1.0 / np.sqrt(fan_in)   # PyTorch default conv init range
        w = jax.random.uniform(kw, (3, 3, cin, cout), jnp.float32, -bound, bound)
        b = jax.random.uniform(kb, (cout,), jnp.float32, -bound, bound)
        params.append((w, b))
    return params


def fc_discriminator_forward(x_nchw, params):
    """Forward pass matching FCDiscriminator.forward; input and output are NCHW."""
    B, C, H, W = x_nchw.shape
    assert C % 8 == 0 and C >= 8, "num_classes must be a positive multiple of 8"
    HW = H * W
    chans = [C, C // 2, C // 4, C // 8, 1]
    chans_p = [_round_up8(c) for c in chans]        # [C, C/2, C/4, 8, 8] for C=32
    cout_pad = chans_p[-1]

    x_flat = x_nchw.reshape(B, C, HW)               # NCHW -> (B, C, H*W): free
    tap_offs, masks_np = _tap_offsets_and_masks(H, W)
    masks = jnp.asarray(masks_np)

    packed = []
    for li, (w, b) in enumerate(params):
        packed.extend(_pack_layer_weights(w, b, chans_p[li], chans_p[li + 1]))

    kernel = functools.partial(_fused_fcd_kernel, H=H, W=W,
                               tap_offs=tuple(tap_offs))

    in_specs = [
        pl.BlockSpec((1, C, HW), lambda b: (b, 0, 0)),   # input, one batch elem
        pl.BlockSpec((9, HW), lambda b: (0, 0)),         # tap masks (shared)
    ]
    for li in range(4):
        cin_p, co_p = chans_p[li], chans_p[li + 1]
        in_specs.append(pl.BlockSpec((co_p, 9 * cin_p), lambda b: (0, 0)))
        in_specs.append(pl.BlockSpec((co_p, 1), lambda b: (0, 0)))

    flops = 2 * B * HW * sum(9 * chans_p[li] * chans_p[li + 1] for li in range(4))
    bytes_accessed = 4 * (x_flat.size + masks.size + B * cout_pad * HW
                          + sum(int(np.prod(p.shape)) for p in packed))

    # NOTE: at 16x16 everything (input, weights, im2col scratch, output) is
    # well under 1 MiB per batch element, so one block per batch element is
    # optimal; larger (segmentation-scale) inputs would need H-row tiling
    # with a 1-row halo to stay inside v7x's 64 MiB VMEM.
    out = pl.pallas_call(
        kernel,
        out_shape=jax.ShapeDtypeStruct((B, cout_pad, HW), jnp.float32),
        grid_spec=pltpu.PrefetchScalarGridSpec(
            num_scalar_prefetch=0,
            grid=(B,),
            in_specs=in_specs,
            out_specs=pl.BlockSpec((1, cout_pad, HW), lambda b: (b, 0, 0)),
            scratch_shapes=[pltpu.VMEM((9 * chans_p[0], HW), jnp.float32)],
        ),
        compiler_params=pltpu.CompilerParams(
            dimension_semantics=("parallel",)),   # v7x: 2 TCs split the batch
        cost_estimate=pl.CostEstimate(flops=flops, transcendentals=0,
                                      bytes_accessed=bytes_accessed),
    )(x_flat, masks, *packed)

    # Channel 0 of the lane-padded classifier output; already NCHW.
    return out[:, :1, :].reshape(B, 1, H, W)


def _reference_forward(x_nchw, params):
    """Pure-JAX reference (lax conv) for correctness check."""
    x = jnp.transpose(x_nchw, (0, 2, 3, 1))
    dn = jax.lax.conv_dimension_numbers(x.shape, params[0][0].shape,
                                        ("NHWC", "HWIO", "NHWC"))
    for li, (w, b) in enumerate(params):
        x = jax.lax.conv_general_dilated(x, w, (1, 1), "SAME",
                                         dimension_numbers=dn)
        x = x + b
        if li < 3:
            x = jnp.where(x >= 0, x, 0.2 * x)
    return jnp.transpose(x, (0, 3, 1, 2))


if __name__ == "__main__":
    num_classes = 32   # must be divisible by 8 (nc -> nc/2 -> nc/4 -> nc/8 -> 1)
    B, H, W = 2, 16, 16

    key = jax.random.PRNGKey(0)
    key, kx = jax.random.split(key)
    x = jax.random.normal(kx, (B, num_classes, H, W), jnp.float32)  # NCHW

    params = init_fc_discriminator_params(key, num_classes)

    out = fc_discriminator_forward(x, params)
    out = jax.block_until_ready(out)

    ref = jax.block_until_ready(_reference_forward(x, params))
    assert out.shape == (B, 1, H, W), out.shape
    np.testing.assert_allclose(np.asarray(out), np.asarray(ref),
                               rtol=1e-5, atol=1e-4)

    print("KERNEL_OK")
</pallas_src>

<mosaic_0001>
module attributes {stable_mosaic.version = 11 : i64} {
  func.func @_fused_fcd_kernel(%arg0: i32, %arg1: memref<1x32x256xf32, #tpu.memory_space<vmem>>, %arg2: memref<9x256xf32, #tpu.memory_space<vmem>>, %arg3: memref<16x288xf32, #tpu.memory_space<vmem>>, %arg4: memref<16x1xf32, #tpu.memory_space<vmem>>, %arg5: memref<8x144xf32, #tpu.memory_space<vmem>>, %arg6: memref<8x1xf32, #tpu.memory_space<vmem>>, %arg7: memref<8x72xf32, #tpu.memory_space<vmem>>, %arg8: memref<8x1xf32, #tpu.memory_space<vmem>>, %arg9: memref<8x72xf32, #tpu.memory_space<vmem>>, %arg10: memref<8x1xf32, #tpu.memory_space<vmem>>, %arg11: memref<1x8x256xf32, #tpu.memory_space<vmem>>, %arg12: memref<288x256xf32, #tpu.memory_space<vmem>>) attributes {dimension_semantics = [#tpu.dimension_semantics<parallel>], iteration_bounds = array<i64: 2>, scalar_prefetch = 0 : i64, scratch_operands = 1 : i64, tpu.core_type = #tpu.core_type<tc>, window_params = [{transform_indices = @transform_0, window_bounds = array<i64: 1, 32, 256>}, {pipeline_mode = #tpu.pipeline_mode<synchronous>, transform_indices = @transform_1, window_bounds = array<i64: 9, 256>}, {pipeline_mode = #tpu.pipeline_mode<synchronous>, transform_indices = @transform_2, window_bounds = array<i64: 16, 288>}, {pipeline_mode = #tpu.pipeline_mode<synchronous>, transform_indices = @transform_3, window_bounds = array<i64: 16, 1>}, {pipeline_mode = #tpu.pipeline_mode<synchronous>, transform_indices = @transform_4, window_bounds = array<i64: 8, 144>}, {pipeline_mode = #tpu.pipeline_mode<synchronous>, transform_indices = @transform_5, window_bounds = array<i64: 8, 1>}, {pipeline_mode = #tpu.pipeline_mode<synchronous>, transform_indices = @transform_6, window_bounds = array<i64: 8, 72>}, {pipeline_mode = #tpu.pipeline_mode<synchronous>, transform_indices = @transform_7, window_bounds = array<i64: 8, 1>}, {pipeline_mode = #tpu.pipeline_mode<synchronous>, transform_indices = @transform_8, window_bounds = array<i64: 8, 72>}, {pipeline_mode = #tpu.pipeline_mode<synchronous>, transform_indices = @transform_9, window_bounds = array<i64: 8, 1>}, {transform_indices = @transform_10, window_bounds = array<i64: 1, 8, 256>}]} {
    %c0 = arith.constant 0 : index
    %c0_0 = arith.constant 0 : index
    %c0_1 = arith.constant 0 : index
    %0 = vector.load %arg1[%c0, %c0_0, %c0_1] : memref<1x32x256xf32, #tpu.memory_space<vmem>>, vector<1x32x256xf32>
    %1 = vector.shape_cast %0 : vector<1x32x256xf32> to vector<32x256xf32>
    %cst = arith.constant 0.000000e+00 : f32
    %2 = vector.broadcast %cst : f32 to vector<32x17xf32>
    %3 = vector.extract_strided_slice %1 {offsets = [0, 0], sizes = [32, 239], strides = [1, 1]} : vector<32x256xf32> to vector<32x239xf32>
    %4 = tpu.concatenate %2, %3 in 1 : vector<32x17xf32>, vector<32x239xf32> -> vector<32x256xf32>
    %c0_2 = arith.constant 0 : index
    %c0_3 = arith.constant 0 : index
    %5 = vector.load %arg2[%c0_2, %c0_3] : memref<9x256xf32, #tpu.memory_space<vmem>>, vector<1x256xf32>
    %6 = vector.broadcast %5 : vector<1x256xf32> to vector<32x256xf32>
    %7 = arith.mulf %4, %6 : vector<32x256xf32>
    %c0_4 = arith.constant 0 : index
    %c0_5 = arith.constant 0 : index
    %8 = vector.load %arg12[%c0_4, %c0_5] : memref<288x256xf32, #tpu.memory_space<vmem>>, vector<32x256xf32>
    tpu.vector_store %arg12[%c0_4, %c0_5], %7 {strides = array<i32>} : memref<288x256xf32, #tpu.memory_space<vmem>>, vector<32x256xf32>,
    %cst_6 = arith.constant 0.000000e+00 : f32
    %9 = vector.broadcast %cst_6 : f32 to vector<32x16xf32>
    %10 = vector.extract_strided_slice %1 {offsets = [0, 0], sizes = [32, 240], strides = [1, 1]} : vector<32x256xf32> to vector<32x240xf32>
    %11 = tpu.concatenate %9, %10 in 1 : vector<32x16xf32>, vector<32x240xf32> -> vector<32x256xf32>
    %c1 = arith.constant 1 : index
    %c0_7 = arith.constant 0 : index
    %12 = vector.load %arg2[%c1, %c0_7] : memref<9x256xf32, #tpu.memory_space<vmem>>, vector<1x256xf32>
    %13 = vector.broadcast %12 : vector<1x256xf32> to vector<32x256xf32>
    %14 = arith.mulf %11, %13 : vector<32x256xf32>
    %c32 = arith.constant 32 : index
    %c0_8 = arith.constant 0 : index
    %15 = vector.load %arg12[%c32, %c0_8] : memref<288x256xf32, #tpu.memory_space<vmem>>, vector<32x256xf32>
    tpu.vector_store %arg12[%c32, %c0_8], %14 {strides = array<i32>} : memref<288x256xf32, #tpu.memory_space<vmem>>, vector<32x256xf32>,
    %cst_9 = arith.constant 0.000000e+00 : f32
    %16 = vector.broadcast %cst_9 : f32 to vector<32x15xf32>
    %17 = vector.extract_strided_slice %1 {offsets = [0, 0], sizes = [32, 241], strides = [1, 1]} : vector<32x256xf32> to vector<32x241xf32>
    %18 = tpu.concatenate %16, %17 in 1 : vector<32x15xf32>, vector<32x241xf32> -> vector<32x256xf32>
    %c2 = arith.constant 2 : index
    %c0_10 = arith.constant 0 : index
    %19 = vector.load %arg2[%c2, %c0_10] : memref<9x256xf32, #tpu.memory_space<vmem>>, vector<1x256xf32>
    %20 = vector.broadcast %19 : vector<1x256xf32> to vector<32x256xf32>
    %21 = arith.mulf %18, %20 : vector<32x256xf32>
    %c64 = arith.constant 64 : index
    %c0_11 = arith.constant 0 : index
    %22 = vector.load %arg12[%c64, %c0_11] : memref<288x256xf32, #tpu.memory_space<vmem>>, vector<32x256xf32>
    tpu.vector_store %arg12[%c64, %c0_11], %21 {strides = array<i32>} : memref<288x256xf32, #tpu.memory_space<vmem>>, vector<32x256xf32>,
    %cst_12 = arith.constant 0.000000e+00 : f32
    %23 = vector.broadcast %cst_12 : f32 to vector<32x1xf32>
    %24 = vector.extract_strided_slice %1 {offsets = [0, 0], sizes = [32, 255], strides = [1, 1]} : vector<32x256xf32> to vector<32x255xf32>
    %25 = tpu.concatenate %23, %24 in 1 : vector<32x1xf32>, vector<32x255xf32> -> vector<32x256xf32>
    %c3 = arith.constant 3 : index
    %c0_13 = arith.constant 0 : index
    %26 = vector.load %arg2[%c3, %c0_13] : memref<9x256xf32, #tpu.memory_space<vmem>>, vector<1x256xf32>
    %27 = vector.broadcast %26 : vector<1x256xf32> to vector<32x256xf32>
    %28 = arith.mulf %25, %27 : vector<32x256xf32>
    %c96 = arith.constant 96 : index
    %c0_14 = arith.constant 0 : index
    %29 = vector.load %arg12[%c96, %c0_14] : memref<288x256xf32, #tpu.memory_space<vmem>>, vector<32x256xf32>
    tpu.vector_store %arg12[%c96, %c0_14], %28 {strides = array<i32>} : memref<288x256xf32, #tpu.memory_space<vmem>>, vector<32x256xf32>,
    %c4 = arith.constant 4 : index
    %c0_15 = arith.constant 0 : index
    %30 = vector.load %arg2[%c4, %c0_15] : memref<9x256xf32, #tpu.memory_space<vmem>>, vector<1x256xf32>
    %31 = vector.broadcast %30 : vector<1x256xf32> to vector<32x256xf32>
    %32 = arith.mulf %1, %31 : vector<32x256xf32>
    %c128 = arith.constant 128 : index
    %c0_16 = arith.constant 0 : index
    %33 = vector.load %arg12[%c128, %c0_16] : memref<288x256xf32, #tpu.memory_space<vmem>>, vector<32x256xf32>
    tpu.vector_store %arg12[%c128, %c0_16], %32 {strides = array<i32>} : memref<288x256xf32, #tpu.memory_space<vmem>>, vector<32x256xf32>,
    %cst_17 = arith.constant 0.000000e+00 : f32
    %34 = vector.broadcast %cst_17 : f32 to vector<32x1xf32>
    %35 = vector.extract_strided_slice %1 {offsets = [0, 1], sizes = [32, 255], strides = [1, 1]} : vector<32x256xf32> to vector<32x255xf32>
    %36 = tpu.concatenate %35, %34 in 1 : vector<32x255xf32>, vector<32x1xf32> -> vector<32x256xf32>
    %c5 = arith.constant 5 : index
    %c0_18 = arith.constant 0 : index
    %37 = vector.load %arg2[%c5, %c0_18] : memref<9x256xf32, #tpu.memory_space<vmem>>, vector<1x256xf32>
    %38 = vector.broadcast %37 : vector<1x256xf32> to vector<32x256xf32>
    %39 = arith.mulf %36, %38 : vector<32x256xf32>
    %c160 = arith.constant 160 : index
    %c0_19 = arith.constant 0 : index
    %40 = vector.load %arg12[%c160, %c0_19] : memref<288x256xf32, #tpu.memory_space<vmem>>, vector<32x256xf32>
    tpu.vector_store %arg12[%c160, %c0_19], %39 {strides = array<i32>} : memref<288x256xf32, #tpu.memory_space<vmem>>, vector<32x256xf32>,
    %cst_20 = arith.constant 0.000000e+00 : f32
    %41 = vector.broadcast %cst_20 : f32 to vector<32x15xf32>
    %42 = vector.extract_strided_slice %1 {offsets = [0, 15], sizes = [32, 241], strides = [1, 1]} : vector<32x256xf32> to vector<32x241xf32>
    %43 = tpu.concatenate %42, %41 in 1 : vector<32x241xf32>, vector<32x15xf32> -> vector<32x256xf32>
    %c6 = arith.constant 6 : index
    %c0_21 = arith.constant 0 : index
    %44 = vector.load %arg2[%c6, %c0_21] : memref<9x256xf32, #tpu.memory_space<vmem>>, vector<1x256xf32>
    %45 = vector.broadcast %44 : vector<1x256xf32> to vector<32x256xf32>
    %46 = arith.mulf %43, %45 : vector<32x256xf32>
    %c192 = arith.constant 192 : index
    %c0_22 = arith.constant 0 : index
    %47 = vector.load %arg12[%c192, %c0_22] : memref<288x256xf32, #tpu.memory_space<vmem>>, vector<32x256xf32>
    tpu.vector_store %arg12[%c192, %c0_22], %46 {strides = array<i32>} : memref<288x256xf32, #tpu.memory_space<vmem>>, vector<32x256xf32>,
    %cst_23 = arith.constant 0.000000e+00 : f32
    %48 = vector.broadcast %cst_23 : f32 to vector<32x16xf32>
    %49 = vector.extract_strided_slice %1 {offsets = [0, 16], sizes = [32, 240], strides = [1, 1]} : vector<32x256xf32> to vector<32x240xf32>
    %50 = tpu.concatenate %49, %48 in 1 : vector<32x240xf32>, vector<32x16xf32> -> vector<32x256xf32>
    %c7 = arith.constant 7 : index
    %c0_24 = arith.constant 0 : index
    %51 = vector.load %arg2[%c7, %c0_24] : memref<9x256xf32, #tpu.memory_space<vmem>>, vector<1x256xf32>
    %52 = vector.broadcast %51 : vector<1x256xf32> to vector<32x256xf32>
    %53 = arith.mulf %50, %52 : vector<32x256xf32>
    %c224 = arith.constant 224 : index
    %c0_25 = arith.constant 0 : index
    %54 = vector.load %arg12[%c224, %c0_25] : memref<288x256xf32, #tpu.memory_space<vmem>>, vector<32x256xf32>
    tpu.vector_store %arg12[%c224, %c0_25], %53 {strides = array<i32>} : memref<288x256xf32, #tpu.memory_space<vmem>>, vector<32x256xf32>,
    %cst_26 = arith.constant 0.000000e+00 : f32
    %55 = vector.broadcast %cst_26 : f32 to vector<32x17xf32>
    %56 = vector.extract_strided_slice %1 {offsets = [0, 17], sizes = [32, 239], strides = [1, 1]} : vector<32x256xf32> to vector<32x239xf32>
    %57 = tpu.concatenate %56, %55 in 1 : vector<32x239xf32>, vector<32x17xf32> -> vector<32x256xf32>
    %c8 = arith.constant 8 : index
    %c0_27 = arith.constant 0 : index
    %58 = vector.load %arg2[%c8, %c0_27] : memref<9x256xf32, #tpu.memory_space<vmem>>, vector<1x256xf32>
    %59 = vector.broadcast %58 : vector<1x256xf32> to vector<32x256xf32>
    %60 = arith.mulf %57, %59 : vector<32x256xf32>
    %c256 = arith.constant 256 : index
    %c0_28 = arith.constant 0 : index
    %61 = vector.load %arg12[%c256, %c0_28] : memref<288x256xf32, #tpu.memory_space<vmem>>, vector<32x256xf32>
    tpu.vector_store %arg12[%c256, %c0_28], %60 {strides = array<i32>} : memref<288x256xf32, #tpu.memory_space<vmem>>, vector<32x256xf32>,
    %c0_29 = arith.constant 0 : index
    %c0_30 = arith.constant 0 : index
    %62 = vector.load %arg3[%c0_29, %c0_30] : memref<16x288xf32, #tpu.memory_space<vmem>>, vector<16x288xf32>
    %c0_31 = arith.constant 0 : index
    %c0_32 = arith.constant 0 : index
    %63 = vector.load %arg12[%c0_31, %c0_32] : memref<288x256xf32, #tpu.memory_space<vmem>>, vector<288x256xf32>
    %cst_33 = arith.constant dense<0.000000e+00> : vector<16x256xf32>
    %64 = tpu.matmul %62, %63, %cst_33 {dimension_numbers = #tpu.dot_dimension_numbers<[1], [0], [0], [1], [0, 0, 1, 1], [], []>} : vector<16x288xf32>, vector<288x256xf32>, vector<16x256xf32> -> vector<16x256xf32>
    %c0_34 = arith.constant 0 : index
    %c0_35 = arith.constant 0 : index
    %65 = vector.load %arg4[%c0_34, %c0_35] : memref<16x1xf32, #tpu.memory_space<vmem>>, vector<16x1xf32>
    %66 = vector.broadcast %65 : vector<16x1xf32> to vector<16x256xf32>
    %67 = arith.addf %64, %66 : vector<16x256xf32>
    %cst_36 = arith.constant 0.000000e+00 : f32
    %68 = vector.broadcast %cst_36 : f32 to vector<16x256xf32>
    %69 = arith.cmpf oge, %67, %68 : vector<16x256xf32>
    %cst_37 = arith.constant 2.000000e-01 : f32
    %70 = vector.broadcast %cst_37 : f32 to vector<16x256xf32>
    %71 = arith.mulf %70, %67 : vector<16x256xf32>
    %72 = arith.select %69, %67, %71 : vector<16x256xi1>, vector<16x256xf32>
    %cst_38 = arith.constant 0.000000e+00 : f32
    %73 = vector.broadcast %cst_38 : f32 to vector<16x17xf32>
    %74 = vector.extract_strided_slice %72 {offsets = [0, 0], sizes = [16, 239], strides = [1, 1]} : vector<16x256xf32> to vector<16x239xf32>
    %75 = tpu.concatenate %73, %74 in 1 : vector<16x17xf32>, vector<16x239xf32> -> vector<16x256xf32>
    %c0_39 = arith.constant 0 : index
    %c0_40 = arith.constant 0 : index
    %76 = vector.load %arg2[%c0_39, %c0_40] : memref<9x256xf32, #tpu.memory_space<vmem>>, vector<1x256xf32>
    %77 = vector.broadcast %76 : vector<1x256xf32> to vector<16x256xf32>
    %78 = arith.mulf %75, %77 : vector<16x256xf32>
    %c0_41 = arith.constant 0 : index
    %c0_42 = arith.constant 0 : index
    %79 = vector.load %arg12[%c0_41, %c0_42] : memref<288x256xf32, #tpu.memory_space<vmem>>, vector<16x256xf32>
    tpu.vector_store %arg12[%c0_41, %c0_42], %78 {strides = array<i32>} : memref<288x256xf32, #tpu.memory_space<vmem>>, vector<16x256xf32>,
    %cst_43 = arith.constant 0.000000e+00 : f32
    %80 = vector.broadcast %cst_43 : f32 to vector<16x16xf32>
    %81 = vector.extract_strided_slice %72 {offsets = [0, 0], sizes = [16, 240], strides = [1, 1]} : vector<16x256xf32> to vector<16x240xf32>
    %82 = tpu.concatenate %80, %81 in 1 : vector<16x16xf32>, vector<16x240xf32> -> vector<16x256xf32>
    %c1_44 = arith.constant 1 : index
    %c0_45 = arith.constant 0 : index
    %83 = vector.load %arg2[%c1_44, %c0_45] : memref<9x256xf32, #tpu.memory_space<vmem>>, vector<1x256xf32>
    %84 = vector.broadcast %83 : vector<1x256xf32> to vector<16x256xf32>
    %85 = arith.mulf %82, %84 : vector<16x256xf32>
    %c16 = arith.constant 16 : index
    %c0_46 = arith.constant 0 : index
    %86 = vector.load %arg12[%c16, %c0_46] : memref<288x256xf32, #tpu.memory_space<vmem>>, vector<16x256xf32>
    tpu.vector_store %arg12[%c16, %c0_46], %85 {strides = array<i32>} : memref<288x256xf32, #tpu.memory_space<vmem>>, vector<16x256xf32>,
    %cst_47 = arith.constant 0.000000e+00 : f32
    %87 = vector.broadcast %cst_47 : f32 to vector<16x15xf32>
    %88 = vector.extract_strided_slice %72 {offsets = [0, 0], sizes = [16, 241], strides = [1, 1]} : vector<16x256xf32> to vector<16x241xf32>
    %89 = tpu.concatenate %87, %88 in 1 : vector<16x15xf32>, vector<16x241xf32> -> vector<16x256xf32>
    %c2_48 = arith.constant 2 : index
    %c0_49 = arith.constant 0 : index
    %90 = vector.load %arg2[%c2_48, %c0_49] : memref<9x256xf32, #tpu.memory_space<vmem>>, vector<1x256xf32>
    %91 = vector.broadcast %90 : vector<1x256xf32> to vector<16x256xf32>
    %92 = arith.mulf %89, %91 : vector<16x256xf32>
    %c32_50 = arith.constant 32 : index
    %c0_51 = arith.constant 0 : index
    %93 = vector.load %arg12[%c32_50, %c0_51] : memref<288x256xf32, #tpu.memory_space<vmem>>, vector<16x256xf32>
    tpu.vector_store %arg12[%c32_50, %c0_51], %92 {strides = array<i32>} : memref<288x256xf32, #tpu.memory_space<vmem>>, vector<16x256xf32>,
    %cst_52 = arith.constant 0.000000e+00 : f32
    %94 = vector.broadcast %cst_52 : f32 to vector<16x1xf32>
    %95 = vector.extract_strided_slice %72 {offsets = [0, 0], sizes = [16, 255], strides = [1, 1]} : vector<16x256xf32> to vector<16x255xf32>
    %96 = tpu.concatenate %94, %95 in 1 : vector<16x1xf32>, vector<16x255xf32> -> vector<16x256xf32>
    %c3_53 = arith.constant 3 : index
    %c0_54 = arith.constant 0 : index
    %97 = vector.load %arg2[%c3_53, %c0_54] : memref<9x256xf32, #tpu.memory_space<vmem>>, vector<1x256xf32>
    %98 = vector.broadcast %97 : vector<1x256xf32> to vector<16x256xf32>
    %99 = arith.mulf %96, %98 : vector<16x256xf32>
    %c48 = arith.constant 48 : index
    %c0_55 = arith.constant 0 : index
    %100 = vector.load %arg12[%c48, %c0_55] : memref<288x256xf32, #tpu.memory_space<vmem>>, vector<16x256xf32>
    tpu.vector_store %arg12[%c48, %c0_55], %99 {strides = array<i32>} : memref<288x256xf32, #tpu.memory_space<vmem>>, vector<16x256xf32>,
    %c4_56 = arith.constant 4 : index
    %c0_57 = arith.constant 0 : index
    %101 = vector.load %arg2[%c4_56, %c0_57] : memref<9x256xf32, #tpu.memory_space<vmem>>, vector<1x256xf32>
    %102 = vector.broadcast %101 : vector<1x256xf32> to vector<16x256xf32>
    %103 = arith.mulf %72, %102 : vector<16x256xf32>
    %c64_58 = arith.constant 64 : index
    %c0_59 = arith.constant 0 : index
    %104 = vector.load %arg12[%c64_58, %c0_59] : memref<288x256xf32, #tpu.memory_space<vmem>>, vector<16x256xf32>
    tpu.vector_store %arg12[%c64_58, %c0_59], %103 {strides = array<i32>} : memref<288x256xf32, #tpu.memory_space<vmem>>, vector<16x256xf32>,
    %cst_60 = arith.constant 0.000000e+00 : f32
    %105 = vector.broadcast %cst_60 : f32 to vector<16x1xf32>
    %106 = vector.extract_strided_slice %72 {offsets = [0, 1], sizes = [16, 255], strides = [1, 1]} : vector<16x256xf32> to vector<16x255xf32>
    %107 = tpu.concatenate %106, %105 in 1 : vector<16x255xf32>, vector<16x1xf32> -> vector<16x256xf32>
    %c5_61 = arith.constant 5 : index
    %c0_62 = arith.constant 0 : index
    %108 = vector.load %arg2[%c5_61, %c0_62] : memref<9x256xf32, #tpu.memory_space<vmem>>, vector<1x256xf32>
    %109 = vector.broadcast %108 : vector<1x256xf32> to vector<16x256xf32>
    %110 = arith.mulf %107, %109 : vector<16x256xf32>
    %c80 = arith.constant 80 : index
    %c0_63 = arith.constant 0 : index
    %111 = vector.load %arg12[%c80, %c0_63] : memref<288x256xf32, #tpu.memory_space<vmem>>, vector<16x256xf32>
    tpu.vector_store %arg12[%c80, %c0_63], %110 {strides = array<i32>} : memref<288x256xf32, #tpu.memory_space<vmem>>, vector<16x256xf32>,
    %cst_64 = arith.constant 0.000000e+00 : f32
    %112 = vector.broadcast %cst_64 : f32 to vector<16x15xf32>
    %113 = vector.extract_strided_slice %72 {offsets = [0, 15], sizes = [16, 241], strides = [1, 1]} : vector<16x256xf32> to vector<16x241xf32>
    %114 = tpu.concatenate %113, %112 in 1 : vector<16x241xf32>, vector<16x15xf32> -> vector<16x256xf32>
    %c6_65 = arith.constant 6 : index
    %c0_66 = arith.constant 0 : index
    %115 = vector.load %arg2[%c6_65, %c0_66] : memref<9x256xf32, #tpu.memory_space<vmem>>, vector<1x256xf32>
    %116 = vector.broadcast %115 : vector<1x256xf32> to vector<16x256xf32>
    %117 = arith.mulf %114, %116 : vector<16x256xf32>
    %c96_67 = arith.constant 96 : index
    %c0_68 = arith.constant 0 : index
    %118 = vector.load %arg12[%c96_67, %c0_68] : memref<288x256xf32, #tpu.memory_space<vmem>>, vector<16x256xf32>
    tpu.vector_store %arg12[%c96_67, %c0_68], %117 {strides = array<i32>} : memref<288x256xf32, #tpu.memory_space<vmem>>, vector<16x256xf32>,
    %cst_69 = arith.constant 0.000000e+00 : f32
    %119 = vector.broadcast %cst_69 : f32 to vector<16x16xf32>
    %120 = vector.extract_strided_slice %72 {offsets = [0, 16], sizes = [16, 240], strides = [1, 1]} : vector<16x256xf32> to vector<16x240xf32>
    %121 = tpu.concatenate %120, %119 in 1 : vector<16x240xf32>, vector<16x16xf32> -> vector<16x256xf32>
    %c7_70 = arith.constant 7 : index
    %c0_71 = arith.constant 0 : index
    %122 = vector.load %arg2[%c7_70, %c0_71] : memref<9x256xf32, #tpu.memory_space<vmem>>, vector<1x256xf32>
    %123 = vector.broadcast %122 : vector<1x256xf32> to vector<16x256xf32>
    %124 = arith.mulf %121, %123 : vector<16x256xf32>
    %c112 = arith.constant 112 : index
    %c0_72 = arith.constant 0 : index
    %125 = vector.load %arg12[%c112, %c0_72] : memref<288x256xf32, #tpu.memory_space<vmem>>, vector<16x256xf32>
    tpu.vector_store %arg12[%c112, %c0_72], %124 {strides = array<i32>} : memref<288x256xf32, #tpu.memory_space<vmem>>, vector<16x256xf32>,
    %cst_73 = arith.constant 0.000000e+00 : f32
    %126 = vector.broadcast %cst_73 : f32 to vector<16x17xf32>
    %127 = vector.extract_strided_slice %72 {offsets = [0, 17], sizes = [16, 239], strides = [1, 1]} : vector<16x256xf32> to vector<16x239xf32>
    %128 = tpu.concatenate %127, %126 in 1 : vector<16x239xf32>, vector<16x17xf32> -> vector<16x256xf32>
    %c8_74 = arith.constant 8 : index
    %c0_75 = arith.constant 0 : index
    %129 = vector.load %arg2[%c8_74, %c0_75] : memref<9x256xf32, #tpu.memory_space<vmem>>, vector<1x256xf32>
    %130 = vector.broadcast %129 : vector<1x256xf32> to vector<16x256xf32>
    %131 = arith.mulf %128, %130 : vector<16x256xf32>
    %c128_76 = arith.constant 128 : index
    %c0_77 = arith.constant 0 : index
    %132 = vector.load %arg12[%c128_76, %c0_77] : memref<288x256xf32, #tpu.memory_space<vmem>>, vector<16x256xf32>
    tpu.vector_store %arg12[%c128_76, %c0_77], %131 {strides = array<i32>} : memref<288x256xf32, #tpu.memory_space<vmem>>, vector<16x256xf32>,
    %c0_78 = arith.constant 0 : index
    %c0_79 = arith.constant 0 : index
    %133 = vector.load %arg5[%c0_78, %c0_79] : memref<8x144xf32, #tpu.memory_space<vmem>>, vector<8x144xf32>
    %c0_80 = arith.constant 0 : index
    %c0_81 = arith.constant 0 : index
    %134 = vector.load %arg12[%c0_80, %c0_81] : memref<288x256xf32, #tpu.memory_space<vmem>>, vector<144x256xf32>
    %cst_82 = arith.constant dense<0.000000e+00> : vector<8x256xf32>
    %135 = tpu.matmul %133, %134, %cst_82 {dimension_numbers = #tpu.dot_dimension_numbers<[1], [0], [0], [1], [0, 0, 1, 1], [], []>} : vector<8x144xf32>, vector<144x256xf32>, vector<8x256xf32> -> vector<8x256xf32>
    %c0_83 = arith.constant 0 : index
    %c0_84 = arith.constant 0 : index
    %136 = vector.load %arg6[%c0_83, %c0_84] : memref<8x1xf32, #tpu.memory_space<vmem>>, vector<8x1xf32>
    %137 = vector.broadcast %136 : vector<8x1xf32> to vector<8x256xf32>
    %138 = arith.addf %135, %137 : vector<8x256xf32>
    %cst_85 = arith.constant 0.000000e+00 : f32
    %139 = vector.broadcast %cst_85 : f32 to vector<8x256xf32>
    %140 = arith.cmpf oge, %138, %139 : vector<8x256xf32>
    %cst_86 = arith.constant 2.000000e-01 : f32
    %141 = vector.broadcast %cst_86 : f32 to vector<8x256xf32>
    %142 = arith.mulf %141, %138 : vector<8x256xf32>
    %143 = arith.select %140, %138, %142 : vector<8x256xi1>, vector<8x256xf32>
    %cst_87 = arith.constant 0.000000e+00 : f32
    %144 = vector.broadcast %cst_87 : f32 to vector<8x17xf32>
    %145 = vector.extract_strided_slice %143 {offsets = [0, 0], sizes = [8, 239], strides = [1, 1]} : vector<8x256xf32> to vector<8x239xf32>
    %146 = tpu.concatenate %144, %145 in 1 : vector<8x17xf32>, vector<8x239xf32> -> vector<8x256xf32>
    %c0_88 = arith.constant 0 : index
    %c0_89 = arith.constant 0 : index
    %147 = vector.load %arg2[%c0_88, %c0_89] : memref<9x256xf32, #tpu.memory_space<vmem>>, vector<1x256xf32>
    %148 = vector.broadcast %147 : vector<1x256xf32> to vector<8x256xf32>
    %149 = arith.mulf %146, %148 : vector<8x256xf32>
    %c0_90 = arith.constant 0 : index
    %c0_91 = arith.constant 0 : index
    %150 = vector.load %arg12[%c0_90, %c0_91] : memref<288x256xf32, #tpu.memory_space<vmem>>, vector<8x256xf32>
    tpu.vector_store %arg12[%c0_90, %c0_91], %149 {strides = array<i32>} : memref<288x256xf32, #tpu.memory_space<vmem>>, vector<8x256xf32>,
    %cst_92 = arith.constant 0.000000e+00 : f32
    %151 = vector.broadcast %cst_92 : f32 to vector<8x16xf32>
    %152 = vector.extract_strided_slice %143 {offsets = [0, 0], sizes = [8, 240], strides = [1, 1]} : vector<8x256xf32> to vector<8x240xf32>
    %153 = tpu.concatenate %151, %152 in 1 : vector<8x16xf32>, vector<8x240xf32> -> vector<8x256xf32>
    %c1_93 = arith.constant 1 : index
    %c0_94 = arith.constant 0 : index
    %154 = vector.load %arg2[%c1_93, %c0_94] : memref<9x256xf32, #tpu.memory_space<vmem>>, vector<1x256xf32>
    %155 = vector.broadcast %154 : vector<1x256xf32> to vector<8x256xf32>
    %156 = arith.mulf %153, %155 : vector<8x256xf32>
    %c8_95 = arith.constant 8 : index
    %c0_96 = arith.constant 0 : index
    %157 = vector.load %arg12[%c8_95, %c0_96] : memref<288x256xf32, #tpu.memory_space<vmem>>, vector<8x256xf32>
    tpu.vector_store %arg12[%c8_95, %c0_96], %156 {strides = array<i32>} : memref<288x256xf32, #tpu.memory_space<vmem>>, vector<8x256xf32>,
    %cst_97 = arith.constant 0.000000e+00 : f32
    %158 = vector.broadcast %cst_97 : f32 to vector<8x15xf32>
    %159 = vector.extract_strided_slice %143 {offsets = [0, 0], sizes = [8, 241], strides = [1, 1]} : vector<8x256xf32> to vector<8x241xf32>
    %160 = tpu.concatenate %158, %159 in 1 : vector<8x15xf32>, vector<8x241xf32> -> vector<8x256xf32>
    %c2_98 = arith.constant 2 : index
    %c0_99 = arith.constant 0 : index
    %161 = vector.load %arg2[%c2_98, %c0_99] : memref<9x256xf32, #tpu.memory_space<vmem>>, vector<1x256xf32>
    %162 = vector.broadcast %161 : vector<1x256xf32> to vector<8x256xf32>
    %163 = arith.mulf %160, %162 : vector<8x256xf32>
    %c16_100 = arith.constant 16 : index
    %c0_101 = arith.constant 0 : index
    %164 = vector.load %arg12[%c16_100, %c0_101] : memref<288x256xf32, #tpu.memory_space<vmem>>, vector<8x256xf32>
    tpu.vector_store %arg12[%c16_100, %c0_101], %163 {strides = array<i32>} : memref<288x256xf32, #tpu.memory_space<vmem>>, vector<8x256xf32>,
    %cst_102 = arith.constant 0.000000e+00 : f32
    %165 = vector.broadcast %cst_102 : f32 to vector<8x1xf32>
    %166 = vector.extract_strided_slice %143 {offsets = [0, 0], sizes = [8, 255], strides = [1, 1]} : vector<8x256xf32> to vector<8x255xf32>
    %167 = tpu.concatenate %165, %166 in 1 : vector<8x1xf32>, vector<8x255xf32> -> vector<8x256xf32>
    %c3_103 = arith.constant 3 : index
    %c0_104 = arith.constant 0 : index
    %168 = vector.load %arg2[%c3_103, %c0_104] : memref<9x256xf32, #tpu.memory_space<vmem>>, vector<1x256xf32>
    %169 = vector.broadcast %168 : vector<1x256xf32> to vector<8x256xf32>
    %170 = arith.mulf %167, %169 : vector<8x256xf32>
    %c24 = arith.constant 24 : index
    %c0_105 = arith.constant 0 : index
    %171 = vector.load %arg12[%c24, %c0_105] : memref<288x256xf32, #tpu.memory_space<vmem>>, vector<8x256xf32>
    tpu.vector_store %arg12[%c24, %c0_105], %170 {strides = array<i32>} : memref<288x256xf32, #tpu.memory_space<vmem>>, vector<8x256xf32>,
    %c4_106 = arith.constant 4 : index
    %c0_107 = arith.constant 0 : index
    %172 = vector.load %arg2[%c4_106, %c0_107] : memref<9x256xf32, #tpu.memory_space<vmem>>, vector<1x256xf32>
    %173 = vector.broadcast %172 : vector<1x256xf32> to vector<8x256xf32>
    %174 = arith.mulf %143, %173 : vector<8x256xf32>
    %c32_108 = arith.constant 32 : index
    %c0_109 = arith.constant 0 : index
    %175 = vector.load %arg12[%c32_108, %c0_109] : memref<288x256xf32, #tpu.memory_space<vmem>>, vector<8x256xf32>
    tpu.vector_store %arg12[%c32_108, %c0_109], %174 {strides = array<i32>} : memref<288x256xf32, #tpu.memory_space<vmem>>, vector<8x256xf32>,
    %cst_110 = arith.constant 0.000000e+00 : f32
    %176 = vector.broadcast %cst_110 : f32 to vector<8x1xf32>
    %177 = vector.extract_strided_slice %143 {offsets = [0, 1], sizes = [8, 255], strides = [1, 1]} : vector<8x256xf32> to vector<8x255xf32>
    %178 = tpu.concatenate %177, %176 in 1 : vector<8x255xf32>, vector<8x1xf32> -> vector<8x256xf32>
    %c5_111 = arith.constant 5 : index
    %c0_112 = arith.constant 0 : index
    %179 = vector.load %arg2[%c5_111, %c0_112] : memref<9x256xf32, #tpu.memory_space<vmem>>, vector<1x256xf32>
    %180 = vector.broadcast %179 : vector<1x256xf32> to vector<8x256xf32>
    %181 = arith.mulf %178, %180 : vector<8x256xf32>
    %c40 = arith.constant 40 : index
    %c0_113 = arith.constant 0 : index
    %182 = vector.load %arg12[%c40, %c0_113] : memref<288x256xf32, #tpu.memory_space<vmem>>, vector<8x256xf32>
    tpu.vector_store %arg12[%c40, %c0_113], %181 {strides = array<i32>} : memref<288x256xf32, #tpu.memory_space<vmem>>, vector<8x256xf32>,
    %cst_114 = arith.constant 0.000000e+00 : f32
    %183 = vector.broadcast %cst_114 : f32 to vector<8x15xf32>
    %184 = vector.extract_strided_slice %143 {offsets = [0, 15], sizes = [8, 241], strides = [1, 1]} : vector<8x256xf32> to vector<8x241xf32>
    %185 = tpu.concatenate %184, %183 in 1 : vector<8x241xf32>, vector<8x15xf32> -> vector<8x256xf32>
    %c6_115 = arith.constant 6 : index
    %c0_116 = arith.constant 0 : index
    %186 = vector.load %arg2[%c6_115, %c0_116] : memref<9x256xf32, #tpu.memory_space<vmem>>, vector<1x256xf32>
    %187 = vector.broadcast %186 : vector<1x256xf32> to vector<8x256xf32>
    %188 = arith.mulf %185, %187 : vector<8x256xf32>
    %c48_117 = arith.constant 48 : index
    %c0_118 = arith.constant 0 : index
    %189 = vector.load %arg12[%c48_117, %c0_118] : memref<288x256xf32, #tpu.memory_space<vmem>>, vector<8x256xf32>
    tpu.vector_store %arg12[%c48_117, %c0_118], %188 {strides = array<i32>} : memref<288x256xf32, #tpu.memory_space<vmem>>, vector<8x256xf32>,
    %cst_119 = arith.constant 0.000000e+00 : f32
    %190 = vector.broadcast %cst_119 : f32 to vector<8x16xf32>
    %191 = vector.extract_strided_slice %143 {offsets = [0, 16], sizes = [8, 240], strides = [1, 1]} : vector<8x256xf32> to vector<8x240xf32>
    %192 = tpu.concatenate %191, %190 in 1 : vector<8x240xf32>, vector<8x16xf32> -> vector<8x256xf32>
    %c7_120 = arith.constant 7 : index
    %c0_121 = arith.constant 0 : index
    %193 = vector.load %arg2[%c7_120, %c0_121] : memref<9x256xf32, #tpu.memory_space<vmem>>, vector<1x256xf32>
    %194 = vector.broadcast %193 : vector<1x256xf32> to vector<8x256xf32>
    %195 = arith.mulf %192, %194 : vector<8x256xf32>
    %c56 = arith.constant 56 : index
    %c0_122 = arith.constant 0 : index
    %196 = vector.load %arg12[%c56, %c0_122] : memref<288x256xf32, #tpu.memory_space<vmem>>, vector<8x256xf32>
    tpu.vector_store %arg12[%c56, %c0_122], %195 {strides = array<i32>} : memref<288x256xf32, #tpu.memory_space<vmem>>, vector<8x256xf32>,
    %cst_123 = arith.constant 0.000000e+00 : f32
    %197 = vector.broadcast %cst_123 : f32 to vector<8x17xf32>
    %198 = vector.extract_strided_slice %143 {offsets = [0, 17], sizes = [8, 239], strides = [1, 1]} : vector<8x256xf32> to vector<8x239xf32>
    %199 = tpu.concatenate %198, %197 in 1 : vector<8x239xf32>, vector<8x17xf32> -> vector<8x256xf32>
    %c8_124 = arith.constant 8 : index
    %c0_125 = arith.constant 0 : index
    %200 = vector.load %arg2[%c8_124, %c0_125] : memref<9x256xf32, #tpu.memory_space<vmem>>, vector<1x256xf32>
    %201 = vector.broadcast %200 : vector<1x256xf32> to vector<8x256xf32>
    %202 = arith.mulf %199, %201 : vector<8x256xf32>
    %c64_126 = arith.constant 64 : index
    %c0_127 = arith.constant 0 : index
    %203 = vector.load %arg12[%c64_126, %c0_127] : memref<288x256xf32, #tpu.memory_space<vmem>>, vector<8x256xf32>
    tpu.vector_store %arg12[%c64_126, %c0_127], %202 {strides = array<i32>} : memref<288x256xf32, #tpu.memory_space<vmem>>, vector<8x256xf32>,
    %c0_128 = arith.constant 0 : index
    %c0_129 = arith.constant 0 : index
    %204 = vector.load %arg7[%c0_128, %c0_129] : memref<8x72xf32, #tpu.memory_space<vmem>>, vector<8x72xf32>
    %c0_130 = arith.constant 0 : index
    %c0_131 = arith.constant 0 : index
    %205 = vector.load %arg12[%c0_130, %c0_131] : memref<288x256xf32, #tpu.memory_space<vmem>>, vector<72x256xf32>
    %cst_132 = arith.constant dense<0.000000e+00> : vector<8x256xf32>
    %206 = tpu.matmul %204, %205, %cst_132 {dimension_numbers = #tpu.dot_dimension_numbers<[1], [0], [0], [1], [0, 0, 1, 1], [], []>} : vector<8x72xf32>, vector<72x256xf32>, vector<8x256xf32> -> vector<8x256xf32>
    %c0_133 = arith.constant 0 : index
    %c0_134 = arith.constant 0 : index
    %207 = vector.load %arg8[%c0_133, %c0_134] : memref<8x1xf32, #tpu.memory_space<vmem>>, vector<8x1xf32>
    %208 = vector.broadcast %207 : vector<8x1xf32> to vector<8x256xf32>
    %209 = arith.addf %206, %208 : vector<8x256xf32>
    %cst_135 = arith.constant 0.000000e+00 : f32
    %210 = vector.broadcast %cst_135 : f32 to vector<8x256xf32>
    %211 = arith.cmpf oge, %209, %210 : vector<8x256xf32>
    %cst_136 = arith.constant 2.000000e-01 : f32
    %212 = vector.broadcast %cst_136 : f32 to vector<8x256xf32>
    %213 = arith.mulf %212, %209 : vector<8x256xf32>
    %214 = arith.select %211, %209, %213 : vector<8x256xi1>, vector<8x256xf32>
    %cst_137 = arith.constant 0.000000e+00 : f32
    %215 = vector.broadcast %cst_137 : f32 to vector<8x17xf32>
    %216 = vector.extract_strided_slice %214 {offsets = [0, 0], sizes = [8, 239], strides = [1, 1]} : vector<8x256xf32> to vector<8x239xf32>
    %217 = tpu.concatenate %215, %216 in 1 : vector<8x17xf32>, vector<8x239xf32> -> vector<8x256xf32>
    %c0_138 = arith.constant 0 : index
    %c0_139 = arith.constant 0 : index
    %218 = vector.load %arg2[%c0_138, %c0_139] : memref<9x256xf32, #tpu.memory_space<vmem>>, vector<1x256xf32>
    %219 = vector.broadcast %218 : vector<1x256xf32> to vector<8x256xf32>
    %220 = arith.mulf %217, %219 : vector<8x256xf32>
    %c0_140 = arith.constant 0 : index
    %c0_141 = arith.constant 0 : index
    %221 = vector.load %arg12[%c0_140, %c0_141] : memref<288x256xf32, #tpu.memory_space<vmem>>, vector<8x256xf32>
    tpu.vector_store %arg12[%c0_140, %c0_141], %220 {strides = array<i32>} : memref<288x256xf32, #tpu.memory_space<vmem>>, vector<8x256xf32>,
    %cst_142 = arith.constant 0.000000e+00 : f32
    %222 = vector.broadcast %cst_142 : f32 to vector<8x16xf32>
    %223 = vector.extract_strided_slice %214 {offsets = [0, 0], sizes = [8, 240], strides = [1, 1]} : vector<8x256xf32> to vector<8x240xf32>
    %224 = tpu.concatenate %222, %223 in 1 : vector<8x16xf32>, vector<8x240xf32> -> vector<8x256xf32>
    %c1_143 = arith.constant 1 : index
    %c0_144 = arith.constant 0 : index
    %225 = vector.load %arg2[%c1_143, %c0_144] : memref<9x256xf32, #tpu.memory_space<vmem>>, vector<1x256xf32>
    %226 = vector.broadcast %225 : vector<1x256xf32> to vector<8x256xf32>
    %227 = arith.mulf %224, %226 : vector<8x256xf32>
    %c8_145 = arith.constant 8 : index
    %c0_146 = arith.constant 0 : index
    %228 = vector.load %arg12[%c8_145, %c0_146] : memref<288x256xf32, #tpu.memory_space<vmem>>, vector<8x256xf32>
    tpu.vector_store %arg12[%c8_145, %c0_146], %227 {strides = array<i32>} : memref<288x256xf32, #tpu.memory_space<vmem>>, vector<8x256xf32>,
    %cst_147 = arith.constant 0.000000e+00 : f32
    %229 = vector.broadcast %cst_147 : f32 to vector<8x15xf32>
    %230 = vector.extract_strided_slice %214 {offsets = [0, 0], sizes = [8, 241], strides = [1, 1]} : vector<8x256xf32> to vector<8x241xf32>
    %231 = tpu.concatenate %229, %230 in 1 : vector<8x15xf32>, vector<8x241xf32> -> vector<8x256xf32>
    %c2_148 = arith.constant 2 : index
    %c0_149 = arith.constant 0 : index
    %232 = vector.load %arg2[%c2_148, %c0_149] : memref<9x256xf32, #tpu.memory_space<vmem>>, vector<1x256xf32>
    %233 = vector.broadcast %232 : vector<1x256xf32> to vector<8x256xf32>
    %234 = arith.mulf %231, %233 : vector<8x256xf32>
    %c16_150 = arith.constant 16 : index
    %c0_151 = arith.constant 0 : index
    %235 = vector.load %arg12[%c16_150, %c0_151] : memref<288x256xf32, #tpu.memory_space<vmem>>, vector<8x256xf32>
    tpu.vector_store %arg12[%c16_150, %c0_151], %234 {strides = array<i32>} : memref<288x256xf32, #tpu.memory_space<vmem>>, vector<8x256xf32>,
    %cst_152 = arith.constant 0.000000e+00 : f32
    %236 = vector.broadcast %cst_152 : f32 to vector<8x1xf32>
    %237 = vector.extract_strided_slice %214 {offsets = [0, 0], sizes = [8, 255], strides = [1, 1]} : vector<8x256xf32> to vector<8x255xf32>
    %238 = tpu.concatenate %236, %237 in 1 : vector<8x1xf32>, vector<8x255xf32> -> vector<8x256xf32>
    %c3_153 = arith.constant 3 : index
    %c0_154 = arith.constant 0 : index
    %239 = vector.load %arg2[%c3_153, %c0_154] : memref<9x256xf32, #tpu.memory_space<vmem>>, vector<1x256xf32>
    %240 = vector.broadcast %239 : vector<1x256xf32> to vector<8x256xf32>
    %241 = arith.mulf %238, %240 : vector<8x256xf32>
    %c24_155 = arith.constant 24 : index
    %c0_156 = arith.constant 0 : index
    %242 = vector.load %arg12[%c24_155, %c0_156] : memref<288x256xf32, #tpu.memory_space<vmem>>, vector<8x256xf32>
    tpu.vector_store %arg12[%c24_155, %c0_156], %241 {strides = array<i32>} : memref<288x256xf32, #tpu.memory_space<vmem>>, vector<8x256xf32>,
    %c4_157 = arith.constant 4 : index
    %c0_158 = arith.constant 0 : index
    %243 = vector.load %arg2[%c4_157, %c0_158] : memref<9x256xf32, #tpu.memory_space<vmem>>, vector<1x256xf32>
    %244 = vector.broadcast %243 : vector<1x256xf32> to vector<8x256xf32>
    %245 = arith.mulf %214, %244 : vector<8x256xf32>
    %c32_159 = arith.constant 32 : index
    %c0_160 = arith.constant 0 : index
    %246 = vector.load %arg12[%c32_159, %c0_160] : memref<288x256xf32, #tpu.memory_space<vmem>>, vector<8x256xf32>
    tpu.vector_store %arg12[%c32_159, %c0_160], %245 {strides = array<i32>} : memref<288x256xf32, #tpu.memory_space<vmem>>, vector<8x256xf32>,
    %cst_161 = arith.constant 0.000000e+00 : f32
    %247 = vector.broadcast %cst_161 : f32 to vector<8x1xf32>
    %248 = vector.extract_strided_slice %214 {offsets = [0, 1], sizes = [8, 255], strides = [1, 1]} : vector<8x256xf32> to vector<8x255xf32>
    %249 = tpu.concatenate %248, %247 in 1 : vector<8x255xf32>, vector<8x1xf32> -> vector<8x256xf32>
    %c5_162 = arith.constant 5 : index
    %c0_163 = arith.constant 0 : index
    %250 = vector.load %arg2[%c5_162, %c0_163] : memref<9x256xf32, #tpu.memory_space<vmem>>, vector<1x256xf32>
    %251 = vector.broadcast %250 : vector<1x256xf32> to vector<8x256xf32>
    %252 = arith.mulf %249, %251 : vector<8x256xf32>
    %c40_164 = arith.constant 40 : index
    %c0_165 = arith.constant 0 : index
    %253 = vector.load %arg12[%c40_164, %c0_165] : memref<288x256xf32, #tpu.memory_space<vmem>>, vector<8x256xf32>
    tpu.vector_store %arg12[%c40_164, %c0_165], %252 {strides = array<i32>} : memref<288x256xf32, #tpu.memory_space<vmem>>, vector<8x256xf32>,
    %cst_166 = arith.constant 0.000000e+00 : f32
    %254 = vector.broadcast %cst_166 : f32 to vector<8x15xf32>
    %255 = vector.extract_strided_slice %214 {offsets = [0, 15], sizes = [8, 241], strides = [1, 1]} : vector<8x256xf32> to vector<8x241xf32>
    %256 = tpu.concatenate %255, %254 in 1 : vector<8x241xf32>, vector<8x15xf32> -> vector<8x256xf32>
    %c6_167 = arith.constant 6 : index
    %c0_168 = arith.constant 0 : index
    %257 = vector.load %arg2[%c6_167, %c0_168] : memref<9x256xf32, #tpu.memory_space<vmem>>, vector<1x256xf32>
    %258 = vector.broadcast %257 : vector<1x256xf32> to vector<8x256xf32>
    %259 = arith.mulf %256, %258 : vector<8x256xf32>
    %c48_169 = arith.constant 48 : index
    %c0_170 = arith.constant 0 : index
    %260 = vector.load %arg12[%c48_169, %c0_170] : memref<288x256xf32, #tpu.memory_space<vmem>>, vector<8x256xf32>
    tpu.vector_store %arg12[%c48_169, %c0_170], %259 {strides = array<i32>} : memref<288x256xf32, #tpu.memory_space<vmem>>, vector<8x256xf32>,
    %cst_171 = arith.constant 0.000000e+00 : f32
    %261 = vector.broadcast %cst_171 : f32 to vector<8x16xf32>
    %262 = vector.extract_strided_slice %214 {offsets = [0, 16], sizes = [8, 240], strides = [1, 1]} : vector<8x256xf32> to vector<8x240xf32>
    %263 = tpu.concatenate %262, %261 in 1 : vector<8x240xf32>, vector<8x16xf32> -> vector<8x256xf32>
    %c7_172 = arith.constant 7 : index
    %c0_173 = arith.constant 0 : index
    %264 = vector.load %arg2[%c7_172, %c0_173] : memref<9x256xf32, #tpu.memory_space<vmem>>, vector<1x256xf32>
    %265 = vector.broadcast %264 : vector<1x256xf32> to vector<8x256xf32>
    %266 = arith.mulf %263, %265 : vector<8x256xf32>
    %c56_174 = arith.constant 56 : index
    %c0_175 = arith.constant 0 : index
    %267 = vector.load %arg12[%c56_174, %c0_175] : memref<288x256xf32, #tpu.memory_space<vmem>>, vector<8x256xf32>
    tpu.vector_store %arg12[%c56_174, %c0_175], %266 {strides = array<i32>} : memref<288x256xf32, #tpu.memory_space<vmem>>, vector<8x256xf32>,
    %cst_176 = arith.constant 0.000000e+00 : f32
    %268 = vector.broadcast %cst_176 : f32 to vector<8x17xf32>
    %269 = vector.extract_strided_slice %214 {offsets = [0, 17], sizes = [8, 239], strides = [1, 1]} : vector<8x256xf32> to vector<8x239xf32>
    %270 = tpu.concatenate %269, %268 in 1 : vector<8x239xf32>, vector<8x17xf32> -> vector<8x256xf32>
    %c8_177 = arith.constant 8 : index
    %c0_178 = arith.constant 0 : index
    %271 = vector.load %arg2[%c8_177, %c0_178] : memref<9x256xf32, #tpu.memory_space<vmem>>, vector<1x256xf32>
    %272 = vector.broadcast %271 : vector<1x256xf32> to vector<8x256xf32>
    %273 = arith.mulf %270, %272 : vector<8x256xf32>
    %c64_179 = arith.constant 64 : index
    %c0_180 = arith.constant 0 : index
    %274 = vector.load %arg12[%c64_179, %c0_180] : memref<288x256xf32, #tpu.memory_space<vmem>>, vector<8x256xf32>
    tpu.vector_store %arg12[%c64_179, %c0_180], %273 {strides = array<i32>} : memref<288x256xf32, #tpu.memory_space<vmem>>, vector<8x256xf32>,
    %c0_181 = arith.constant 0 : index
    %c0_182 = arith.constant 0 : index
    %275 = vector.load %arg9[%c0_181, %c0_182] : memref<8x72xf32, #tpu.memory_space<vmem>>, vector<8x72xf32>
    %c0_183 = arith.constant 0 : index
    %c0_184 = arith.constant 0 : index
    %276 = vector.load %arg12[%c0_183, %c0_184] : memref<288x256xf32, #tpu.memory_space<vmem>>, vector<72x256xf32>
    %cst_185 = arith.constant dense<0.000000e+00> : vector<8x256xf32>
    %277 = tpu.matmul %275, %276, %cst_185 {dimension_numbers = #tpu.dot_dimension_numbers<[1], [0], [0], [1], [0, 0, 1, 1], [], []>} : vector<8x72xf32>, vector<72x256xf32>, vector<8x256xf32> -> vector<8x256xf32>
    %c0_186 = arith.constant 0 : index
    %c0_187 = arith.constant 0 : index
    %278 = vector.load %arg10[%c0_186, %c0_187] : memref<8x1xf32, #tpu.memory_space<vmem>>, vector<8x1xf32>
    %279 = vector.broadcast %278 : vector<8x1xf32> to vector<8x256xf32>
    %280 = arith.addf %277, %279 : vector<8x256xf32>
    %c0_188 = arith.constant 0 : index
    %c0_189 = arith.constant 0 : index
    %c0_190 = arith.constant 0 : index
    %281 = vector.load %arg11[%c0_188, %c0_189, %c0_190] : memref<1x8x256xf32, #tpu.memory_space<vmem>>, vector<1x8x256xf32>
    %282 = vector.shape_cast %281 : vector<1x8x256xf32> to vector<8x256xf32>
    %283 = vector.shape_cast %280 : vector<8x256xf32> to vector<1x8x256xf32>
    tpu.vector_store %arg11[%c0_188, %c0_189, %c0_190], %283 {strides = array<i32>} : memref<1x8x256xf32, #tpu.memory_space<vmem>>, vector<1x8x256xf32>,
    return
  }
  func.func @transform_0(%arg0: i32) -> (i32, i32, i32) {
    %c0_i32 = arith.constant 0 : i32
    %c0_i32_0 = arith.constant 0 : i32
    %c0_i32_1 = arith.constant 0 : i32
    return %arg0, %c0_i32, %c0_i32_0 : i32, i32, i32
  }
  func.func @transform_1(%arg0: i32) -> (i32, i32) {
    %c0_i32 = arith.constant 0 : i32
    %c0_i32_0 = arith.constant 0 : i32
    %c0_i32_1 = arith.constant 0 : i32
    return %c0_i32, %c0_i32_0 : i32, i32
  }
  func.func @transform_2(%arg0: i32) -> (i32, i32) {
    %c0_i32 = arith.constant 0 : i32
    %c0_i32_0 = arith.constant 0 : i32
    %c0_i32_1 = arith.constant 0 : i32
    return %c0_i32, %c0_i32_0 : i32, i32
  }
  func.func @transform_3(%arg0: i32) -> (i32, i32) {
    %c0_i32 = arith.constant 0 : i32
    %c0_i32_0 = arith.constant 0 : i32
    %c0_i32_1 = arith.constant 0 : i32
    return %c0_i32, %c0_i32_0 : i32, i32
  }
  func.func @transform_4(%arg0: i32) -> (i32, i32) {
    %c0_i32 = arith.constant 0 : i32
    %c0_i32_0 = arith.constant 0 : i32
    %c0_i32_1 = arith.constant 0 : i32
    return %c0_i32, %c0_i32_0 : i32, i32
  }
  func.func @transform_5(%arg0: i32) -> (i32, i32) {
    %c0_i32 = arith.constant 0 : i32
    %c0_i32_0 = arith.constant 0 : i32
    %c0_i32_1 = arith.constant 0 : i32
    return %c0_i32, %c0_i32_0 : i32, i32
  }
  func.func @transform_6(%arg0: i32) -> (i32, i32) {
    %c0_i32 = arith.constant 0 : i32
    %c0_i32_0 = arith.constant 0 : i32
    %c0_i32_1 = arith.constant 0 : i32
    return %c0_i32, %c0_i32_0 : i32, i32
  }
  func.func @transform_7(%arg0: i32) -> (i32, i32) {
    %c0_i32 = arith.constant 0 : i32
    %c0_i32_0 = arith.constant 0 : i32
    %c0_i32_1 = arith.constant 0 : i32
    return %c0_i32, %c0_i32_0 : i32, i32
  }
  func.func @transform_8(%arg0: i32) -> (i32, i32) {
    %c0_i32 = arith.constant 0 : i32
    %c0_i32_0 = arith.constant 0 : i32
    %c0_i32_1 = arith.constant 0 : i32
    return %c0_i32, %c0_i32_0 : i32, i32
  }
  func.func @transform_9(%arg0: i32) -> (i32, i32) {
    %c0_i32 = arith.constant 0 : i32
    %c0_i32_0 = arith.constant 0 : i32
    %c0_i32_1 = arith.constant 0 : i32
    return %c0_i32, %c0_i32_0 : i32, i32
  }
  func.func @transform_10(%arg0: i32) -> (i32, i32, i32) {
    %c0_i32 = arith.constant 0 : i32
    %c0_i32_0 = arith.constant 0 : i32
    %c0_i32_1 = arith.constant 0 : i32
    return %arg0, %c0_i32, %c0_i32_0 : i32, i32, i32
  }
}

</mosaic_0001>

<bundles_post_ra>
// kernel: tpu_custom_call.1
= control target key start
LH: loop header
LB: loop body
LE: loop exit
PB: predicated region body
PF: predicated region fallthrough
CT: control target
= control target key end

     0   :  { %s3401_s0 = inlined_call_operand.hbm [shape: f32[2,32,256], index: 0, kind: input, shape index: {}]   ;;  %s3402_s1 = inlined_call_operand.vmem [shape: f32[9,256], index: 1, kind: input, shape index: {}]   ;;  %s3403_s2 = inlined_call_operand.hbm [shape: f32[16,288], index: 2, kind: input, shape index: {}]   ;;  %s3404_s3 = inlined_call_operand.vmem [shape: f32[16,1], index: 3, kind: input, shape index: {}]   ;;  %s3405_s4 = inlined_call_operand.hbm [shape: f32[8,144], index: 4, kind: input, shape index: {}]   ;;  %s3406_s5 = inlined_call_operand.vmem [shape: f32[8,1], index: 5, kind: input, shape index: {}]   ;;  %s3407_s6 = inlined_call_operand.vmem [shape: f32[8,72], index: 6, kind: input, shape index: {}]   ;;  %s3408_s7 = inlined_call_operand.vmem [shape: f32[8,1], index: 7, kind: input, shape index: {}]   ;;  %s3409_s8 = inlined_call_operand.vmem [shape: f32[8,72], index: 8, kind: input, shape index: {}]   ;;  %s3410_s9 = inlined_call_operand.vmem [shape: f32[8,1], index: 9, kind: input, shape index: {}]   ;;  %s3411_s10 = inlined_call_operand.hbm [shape: f32[2,8,256], index: 10, kind: output, shape index: {}]  }
   0x1   :  { %3413 = sst [smem:[#allocation15_spill]] %s3403_s2 }
   0x2   :  { %3414 = sst [smem:[#allocation16_spill]] %s3405_s4 }
   0x3   :  { %15 = vsyncpa [#allocation4], 0 }
   0x4   :  { %17 = vsyncpa [#allocation4 + $0x1], 0 }
   0x5   :  { %18 = vsyncpa [#allocation7], 0 }
   0x6   :  { %19 = vsyncpa [#allocation5], 0 }
   0x7   :  { %21 = vsyncpa [#allocation5 + $0x1], 0  ;;  %s2475_s13 = smov 0   ;;  %s2477_s14 = smov 0  }
   0x8   :  { %s2479_s15 = smov 0   ;;  %s2481_s16 = smov 0  }
   0x9 LB: > { %3415 = sst [smem:[#allocation13_spill]] %s2399_s15  ;;  %s2496_s17 = sadd.s32 4294967295, %s2403_s16   ;;  %s2403_s16 = sphi %s2481_s16, %s3429_s16   ;;  %s2399_s15 = sphi %s2479_s15, %s3426_s15   ;;  %s2395_s14 = sphi %s2477_s14, %s3428_s14   ;;  %s2391_s13 = sphi %s2475_s13, %s3427_s13  }
   0xa   : > { %s2098_s18 = sadd.s32 4294967294, %s2403_s16   ;;  %p47_p0 = scmp.ne.s32.totalorder %s2395_s14, %s2391_s13 }
   0xb   : > { %p48_p1 = scmp.eq.s32.totalorder %s2496_s17, 0  ;;  %p260_p2 = scmp.eq.s32.totalorder %s2496_s17, 1 }
   0xc   : > { %p266_p3 = scmp.eq.s32.totalorder %s2098_s18, 1  ;;  %p2099_p5 = scmp.ge.s32.totalorder %s2403_s16, 1 }
   0xd   : > { %p2505_p4 = por %p48_p1, %p47_p0  ;;  %p273_p7 = scmp.lt.s32.totalorder %s2403_s16, 3 }
   0xe   : > { %p2510_p6 = por %p266_p3, %p47_p0  ;;  %s3418_s2 = sld [smem:[#allocation15_spill]] }
   0xf   : > { %p2518_p8 = pnand %p2099_p5, %p273_p7  ;;  %s2405_s25 = smov [#allocation6]  }
  0x10   : > { %s289_s26 = sshll.u32 %s2405_s25, 4  ;;  %s3420_s4 = sld [smem:[#allocation16_spill]]  ;;  %s290_s26 = int_to_ptr.vmem [resolvable:$true] %s289_s26 }
  0x11   : > { %p2172_p9 = pneg %p2518_p8  ;;  %s2406_s30 = smov 384  }
  0x12   : > { %s2407_s11 = smov 24   ;;  %s2408_s12 = smov [#allocation8]  }
  0x13   : > { %p2173_p10 = pnand %p2172_p9, %p48_p1  ;;  %s307_s18 = sshll.u32 %s2408_s12, 4  ;;  %s308_s18 = int_to_ptr.vmem [resolvable:$true] %s307_s18 }
  0x14   : > { %s287_s23 = sshll.u32 %s3418_s2, 4  ;;  %s2531_s21 = sadd.s32 1, %s2403_s16   ;;  %s288_s23 = int_to_ptr.hbm [resolvable:$true] %s287_s23 }
  0x15   : > { %2175 = dma.hbm_to_vmem [thread:$0]  (!%p2173_p10), %s288_s23, 768, %s290_s26, [#allocation7], %s2406_s30, %s2406_s30, %s2407_s11  }
  0x16   : > { %s305_s29 = sshll.u32 %s3420_s4, 4  ;;  %s34_s22 = sadd.s32 1, %s2399_s15  ;;  %s306_s29 = int_to_ptr.hbm [resolvable:$true] %s305_s29 }
  0x17   : > { %2178 = dma.hbm_to_vmem [thread:$0]  (!%p2173_p10), %s306_s29, 256, %s308_s18, [#allocation7]  }
  0x18   : > { %s31_s25 = ssub.s32 %s2403_s16, %s2531_s21  ;;  %p41_p12 = scmp.ne.s32.totalorder %s2399_s15, %s2395_s14 }
  0x19   : > { %p32_p13 = scmp.eq.s32.totalorder %s31_s25, 0  ;;  %p42_p0 = scmp.eq.s32.totalorder %s2403_s16, 0 }
  0x1a   : > { %p2541_p3 = por %p260_p2, %p41_p12  ;;  %p2189_p5 = scmp.lt.s32.totalorder %s2403_s16, 2 }
  0x1b   : > { %s2547_s23 = scalar_select %p32_p13, %s2399_s15, %s34_s22  }
  0x1c   : > { %p43_p7 = por %p42_p0, %p41_p12  ;;  %s333_s26 = sand.u32 1, %s2399_s15  }
  0x1d   : > { %3422 = sst [smem:[#allocation14_spill]] %s2547_s23  ;;  %s2103_s28 = sshll.u32 %s333_s26, 6 }
  0x1e   : > { %s2158_s29 = sshll.u32 %s2403_s16, 6  ;;  %s337_s18 = scalar_lea.vmem [#allocation3], %s2103_s28 }
  0x1f   : > { %s342_s12 = scalar_lea.hbm %s3401_s0, %s2158_s29  ;;  %s345_s2 = sshll.u32 %s337_s18, 4  ;;  %s346_s2 = int_to_ptr.vmem [resolvable:$true] %s345_s2 }
  0x20   : > { %s343_s25 = sshll.u32 %s342_s12, 4  ;;  %p2554_p2 = pnand %p2189_p5, %p43_p7  ;;  %s344_s25 = int_to_ptr.hbm [resolvable:$true] %s343_s25 }
  0x21   : > { %s334_s22 = scalar_lea.sflag [#allocation4], %s333_s26  ;;  %s2303_s23 = sshra.s32 %s344_s25, 4  ;;  %s2304_s23 = int_to_ptr.hbm [resolvable:$true] %s2303_s23 }
  0x22   : > { %s2305_s15 = scalar_lea.hbm %s2304_s23, 64  ;;  %p2307_p10 = pneg %p2554_p2 }
  0x23   : > { %p2306_p9 = scmp.ne.s32.totalorder %s2304_s23, %s2305_s15  ;;  %s2310_s30 = scalar_lea.hbm %s3401_s0, 128 }
  0x24   : > { %p2311_p0 = scmp.lt.s32.totalorder %s2304_s23, %s3401_s0  ;;  %p2312_p5 = scmp.lt.s32.totalorder %s2310_s30, %s2305_s15 }
  0x25   : > { %p2308_p12 = pnand %p2307_p10, %p2306_p9 }
  0x26   : > { %p2313_p7 = por %p2312_p5, %p2311_p0 }
  0x27   : > { %p2309_p13 = pneg %p2308_p12 }
  0x29   : > { %p2314_p11 = pnand %p2313_p7, %p2309_p13 }
  0x2b   : > { %2317 = shalt.err (!%p2314_p11)
}
  0x2c   : > { %s2409_s26 = smov 256   ;;  %s2410_s18 = smov 16  }
  0x2d   : > { %2182 = dma.hbm_to_vmem [thread:$0]  (!%p2554_p2), %s344_s25, 1024, %s346_s2, %s334_s22, %s2409_s26, %s2409_s26, %s2410_s18  }
  0x2e   : > { %357 = sbr.rel (%p2518_p8) target bundleno = 1384 (0x568), region = 60  ;;  %s2571_s29 = sand.u32 (!%p2518_p8), 1, %s2395_s14  }
  0x2f   : > { %s2107_s28 = sshll.u32 (!%p2518_p8), %s2571_s29, 6  ;;  %s360_s23 = scalar_lea.sflag (!%p2518_p8), [#allocation4], %s2571_s29 }
  0x30   : > { %s363_s15 = scalar_lea.vmem (!%p2518_p8), [#allocation3], %s2107_s28 }
  0x33   : > { %2378 = dma.done.wait (%p2505_p4), %s360_s23, 1024  }
  0x34   : > { %2380 = vsyncadd (%p2505_p4), %s360_s23, 4294966272 }
  0x35   : > { %2382 = dma.done.wait (%p48_p1), [#allocation7], 1024  }
  0x36   : > { %2384 = vsyncadd (%p48_p1), [#allocation7], 4294966272  ;;  %v2583_v0 = vld [vmem:[%s363_s15 + $0x38] sm:$0xff]  ;;  %v2585_v1 = vld [vmem:[%s363_s15 + $0x30] sm:$0xff]  ;;  %s2411_s2 = smov 1   ;;  %s2412_s4 = smov 15  }
  0x37   : > { %v2587_v2 = vld [vmem:[%s363_s15 + $0x10] sm:$0xff]  ;;  %608 = vrot.lane.b32.xlu2 %v2583_v0, %s2411_s2  ;;  %606 = vrot.lane.b32.xlu0 %v2585_v1, %s2411_s2  ;;  %v2595_v3 = vld [vmem:[%s363_s15 + $0x20] sm:$0xff]  ;;  %s2413_s19 = smov 112   ;;  %s2414_s24 = smov 16   ;;  %vm610_vm0 = vcmask 7168   ;;  %vm554_vm1 = vcmask 121856  }
  0x38   : > { %598 = vrot.lane.b32.xlu1 %v2587_v2, %s2411_s2  ;;  %v2597_v4 = vld [vmem:[%s363_s15] sm:$0xff]  ;;  %v2605_v5 = vld [vmem:[%s363_s15 + $0x28] sm:$0xff]  ;;  %v2613_v6 = vld [vmem:[%s363_s15 + $0x18] sm:$0xff]  ;;  %s2415_s25 = smov 111   ;;  %s2416_s22 = smov 113   ;;  %vm498_vm2 = vcmask 130048  }
  0x39   : > { %v2621_v7 = vld [vmem:[%s363_s15 + $0x8] sm:$0xff]  ;;  %s2417_s30 = smov 17   ;;  %s2418_s11 = smov 127   ;;  %v2118_v59 = vld [vmem:[%s3402_s1 + $0x10] ss:$8 sm:$0x3] }
  0x3a   : > { %v2113_v11 = vld [vmem:[%s3402_s1 + $0x3] ss:$8 sm:$0x3]  ;;  %v2712_v21 = vld [vmem:[%s3402_s1 + $0x2] ss:$8 sm:$0x3] }
  0x3b   : > { %v630_v12 = vperm.slane %v2113_v11, 0  ;;  %v2694_v13 = vperm.slane %v2113_v11, 1  ;;  %v574_v29 = vperm.slane %v2712_v21, 0  ;;  %v2735_v36 = vld [vmem:[%s3402_s1 + $0x1] ss:$8 sm:$0x3] }
  0x3c   : > { %v2746_v45 = vperm.slane %v2735_v36, 0  ;;  %vm857_vm3 = vcmask 908288   ;;  %v575_v62 = vperm.slane %v2712_v21, 1  ;;  %v2781_v63 = vperm.slane %v2118_v59, 1  ;;  %s2110_s23 = sshll.u32 %s2571_s29, 4  ;;  %s2159_s15 = sshll.u32 %s2496_s17, 4 }
  0x3d   : > { %vm801_vm4 = vcmask 916480   ;;  %vm443_vm5 = vcmask 138240   ;;  %vm745_vm6 = vcmask 924672   ;;  %vm689_vm7 = vcmask 1039360   ;;  %s2004_s18 = scalar_lea.hbm %s3411_s10, %s2159_s15  ;;  %s410_s28 = scalar_lea.vmem [#allocation9], %s2110_s23 }
  0x3e   : > { %vm987_vm8 = vcmask 261120   ;;  %vm1716_vm15 = vcmask 588800  }
  0x3f   : > { %550 = vrot.lane.b32.xlu2 %v2585_v1, %s2412_s4  ;;  %602 = vrot.lane.b32.xlu0 %v2595_v3, %s2411_s2 }
  0x40   : > { %594 = vrot.lane.b32.xlu1 %v2597_v4, %s2411_s2 }
  0x47   : > { %546 = vrot.lane.b32.xlu2 %v2595_v3, %s2412_s4  ;;  %604 = vrot.lane.b32.xlu0 %v2605_v5, %s2411_s2 }
  0x48   : > { %799 = vrot.lane.b32.xlu1 %v2583_v0, %s2413_s19 }
  0x4f   : > { %600 = vrot.lane.b32.xlu0 %v2613_v6, %s2411_s2  ;;  %542 = vrot.lane.b32.xlu2 %v2587_v2, %s2412_s4 }
  0x50   : > { %795 = vrot.lane.b32.xlu1 %v2605_v5, %s2413_s19 }
  0x57   : > { %596 = vrot.lane.b32.xlu0 %v2621_v7, %s2411_s2  ;;  %538 = vrot.lane.b32.xlu2 %v2597_v4, %s2412_s4 }
  0x58   : > { %791 = vrot.lane.b32.xlu1 %v2613_v6, %s2413_s19 }
  0x5f   : > { %552 = vrot.lane.b32.xlu0 %v2583_v0, %s2412_s4  ;;  %494 = vrot.lane.b32.xlu2 %v2585_v1, %s2414_s24 }
  0x60   : > { %787 = vrot.lane.b32.xlu1 %v2621_v7, %s2413_s19 }
  0x67   : > { %548 = vrot.lane.b32.xlu0 %v2605_v5, %s2412_s4  ;;  %853 = vrot.lane.b32.xlu2 %v2585_v1, %s2415_s25 }
  0x68   : > { %743 = vrot.lane.b32.xlu1 %v2583_v0, %s2416_s22 }
  0x6f   : > { %855 = vrot.lane.b32.xlu0 %v2583_v0, %s2415_s25  ;;  %544 = vrot.lane.b32.xlu2 %v2613_v6, %s2412_s4 }
  0x70   : > { %490 = vrot.lane.b32.xlu1 %v2595_v3, %s2414_s24 }
  0x77   : > { %739 = vrot.lane.b32.xlu0 %v2605_v5, %s2416_s22  ;;  %851 = vrot.lane.b32.xlu2 %v2605_v5, %s2415_s25 }
  0x78   : > { %849 = vrot.lane.b32.xlu1 %v2595_v3, %s2415_s25 }
  0x7f   : > { %486 = vrot.lane.b32.xlu0 %v2587_v2, %s2414_s24  ;;  %735 = vrot.lane.b32.xlu2 %v2613_v6, %s2416_s22 }
  0x80   : > { %540 = vrot.lane.b32.xlu1 %v2621_v7, %s2412_s4 }
  0x87   : > { %845 = vrot.lane.b32.xlu0 %v2587_v2, %s2415_s25  ;;  %482 = vrot.lane.b32.xlu2 %v2597_v4, %s2414_s24 }
  0x88   : > { %847 = vrot.lane.b32.xlu1 %v2613_v6, %s2415_s25 }
  0x8f   : > { %496 = vrot.lane.b32.xlu0 %v2583_v0, %s2414_s24  ;;  %841 = vrot.lane.b32.xlu2 %v2597_v4, %s2415_s25 }
  0x90   : > { %731 = vrot.lane.b32.xlu1 %v2621_v7, %s2416_s22 }
  0x91   : > { %v609_v8 = vpop.permute.xlu2 %608 }
  0x97   : > { %843 = vrot.lane.b32.xlu0 %v2621_v7, %s2415_s25  ;;  %492 = vrot.lane.b32.xlu2 %v2605_v5, %s2414_s24 }
  0x98   : > { %439 = vrot.lane.b32.xlu1 %v2585_v1, %s2417_s30 }
  0x99   : > { %v2677_v9 = vpop.permute.xlu2 %550 }
  0x9a   : > { %v570_v30 = vsel %vm554_vm1, 0.0, %v2677_v9 }
  0x9b   : > { %v584_v34 = vmul.f32 %v574_v29, %v570_v30 }
  0x9f   : > { %687 = vrot.lane.b32.xlu0 %v2583_v0, %s2418_s11  ;;  %488 = vrot.lane.b32.xlu2 %v2613_v6, %s2414_s24 }
  0xa0   : > { %435 = vrot.lane.b32.xlu1 %v2595_v3, %s2417_s30 }
  0xa1   : > { %v2685_v10 = vpop.permute.xlu2 %546 }
  0xa2   : > { %v569_v33 = vsel %vm554_vm1, 0.0, %v2685_v10 }
  0xa3   : > { %v582_v39 = vmul.f32 %v574_v29, %v569_v33 }
  0xa7   : > { %683 = vrot.lane.b32.xlu0 %v2605_v5, %s2418_s11  ;;  %431 = vrot.lane.b32.xlu2 %v2587_v2, %s2417_s30 }
  0xa8   : > { %797 = vrot.lane.b32.xlu1 %v2585_v1, %s2413_s19 }
  0xa9   : > { %v607_v14 = vpop.permute.xlu0 %606  ;;  %v2698_v15 = vpop.permute.xlu2 %542 }
  0xaa   : > { %v599_v16 = vpop.permute.xlu1 %598  ;;  %v626_v17 = vsel %vm610_vm0, 0.0, %v607_v14  ;;  %v614_v18 = vsel %vm610_vm0, %v607_v14, %v609_v8  ;;  %v568_v35 = vsel %vm554_vm1, 0.0, %v2698_v15 }
  0xab   : > { %v640_v19 = vmul.f32 %v630_v12, %v626_v17  ;;  %v641_v20 = vmul.f32 %v2694_v13, %v614_v18  ;;  %v624_v24 = vsel %vm610_vm0, 0.0, %v599_v16  ;;  %v580_v44 = vmul.f32 %v574_v29, %v568_v35 }
  0xac   : > { %v636_v31 = vmul.f32 %v630_v12, %v624_v24 }
  0xad   : > { %994 = vmatpush.msra.mxu0 %v640_v19  ;;  %1063 = vmatpush.msra.mxu3 %v641_v20 }
  0xaf   : > { %484 = vrot.lane.b32.xlu0 %v2621_v7, %s2414_s24  ;;  %793 = vrot.lane.b32.xlu2 %v2595_v3, %s2413_s19 }
  0xb0   : > { %679 = vrot.lane.b32.xlu1 %v2613_v6, %s2418_s11 }
  0xb1   : > { %v603_v22 = vpop.permute.xlu0 %602  ;;  %v2714_v23 = vpop.permute.xlu2 %538 }
  0xb2   : > { %v625_v25 = vsel %vm610_vm0, 0.0, %v603_v22  ;;  %v595_v26 = vpop.permute.xlu1 %594  ;;  %v567_v40 = vsel %vm554_vm1, 0.0, %v2714_v23 }
  0xb3   : > { %v623_v27 = vsel %vm610_vm0, 0.0, %v595_v26  ;;  %v638_v28 = vmul.f32 %v630_v12, %v625_v25  ;;  %v578_v47 = vmul.f32 %v574_v29, %v567_v40 }
  0xb4   : > { %v634_v32 = vmul.f32 %v630_v12, %v623_v27 }
  0xb5   : > { %995 = vmatpush.msra.mxu0 %v638_v28 }
  0xb7   : > { %996 = vmatpush.msra.mxu0 %v636_v31  ;;  %427 = vrot.lane.b32.xlu0 %v2597_v4, %s2417_s30 }
  0xb8   : > { %675 = vrot.lane.b32.xlu2 %v2621_v7, %s2418_s11  ;;  %441 = vrot.lane.b32.xlu1 %v2583_v0, %s2417_s30 }
  0xb9   : > { %v605_v37 = vpop.permute.xlu0 %604  ;;  %v2737_v38 = vpop.permute.xlu2 %494  ;;  %997 = vmatpush.msra.mxu0 %v634_v32 }
  0xba   : > { %v613_v41 = vsel %vm610_vm0, %v603_v22, %v605_v37  ;;  %v2742_v42 = vpop.permute.xlu1 %799  ;;  %v514_v46 = vsel %vm498_vm2, 0.0, %v2737_v38  ;;  %v877_v22 = vperm.slane %v2118_v59, 0 }
  0xbb   : > { %998 = vmatpush.msra.mxu0 %v584_v34  ;;  %v639_v43 = vmul.f32 %v2694_v13, %v613_v41  ;;  %v528_v48 = vmul.f32 %v2746_v45, %v514_v46 }
  0xbd   : > { %1064 = vmatpush.msra.mxu3 %v639_v43  ;;  %999 = vmatpush.msra.mxu0 %v582_v39 }
  0xbf   : > { %789 = vrot.lane.b32.xlu0 %v2587_v2, %s2413_s19  ;;  %1000 = vmatpush.msra.mxu0 %v580_v44 }
  0xc0   : > { %785 = vrot.lane.b32.xlu2 %v2597_v4, %s2413_s19  ;;  %437 = vrot.lane.b32.xlu1 %v2605_v5, %s2417_s30 }
  0xc1   : > { %v601_v49 = vpop.permute.xlu0 %600  ;;  %v854_v50 = vpop.permute.xlu2 %853  ;;  %1001 = vmatpush.msra.mxu0 %v578_v47 }
  0xc2   : > { %v612_v51 = vsel %vm610_vm0, %v599_v16, %v601_v49  ;;  %v2758_v52 = vpop.permute.xlu1 %795 }
  0xc3   : > { %v637_v53 = vmul.f32 %v2694_v13, %v612_v51  ;;  %1002 = vmatpush.msra.mxu0 %v528_v48 }
  0xc5   : > { %1065 = vmatpush.msra.mxu3 %v637_v53 }
  0xc7   : > { %433 = vrot.lane.b32.xlu0 %v2613_v6, %s2417_s30 }
  0xc8   : > { %429 = vrot.lane.b32.xlu2 %v2621_v7, %s2417_s30  ;;  %741 = vrot.lane.b32.xlu1 %v2585_v1, %s2416_s22 }
  0xc9   : > { %v597_v54 = vpop.permute.xlu0 %596  ;;  %v545_v55 = vpop.permute.xlu2 %544 }
  0xca   : > { %v611_v56 = vsel %vm610_vm0, %v595_v26, %v597_v54  ;;  %v2768_v57 = vpop.permute.xlu1 %791  ;;  %v556_v17 = vsel %vm554_vm1, %v2698_v15, %v545_v55 }
  0xcb   : > { %v635_v58 = vmul.f32 %v2694_v13, %v611_v56  ;;  %v581_v21 = vmul.f32 %v575_v62, %v556_v17 }
  0xcd   : > { %1066 = vmatpush.msra.mxu3 %v635_v58 }
  0xcf   : > { %737 = vrot.lane.b32.xlu0 %v2595_v3, %s2416_s22 }
  0xd0   : > { %729 = vrot.lane.b32.xlu2 %v2597_v4, %s2416_s22  ;;  %733 = vrot.lane.b32.xlu1 %v2587_v2, %s2416_s22 }
  0xd1   : > { %v553_v60 = vpop.permute.xlu0 %552  ;;  %v852_v61 = vpop.permute.xlu2 %851 }
  0xd2   : > { %v558_v8 = vsel %vm554_vm1, %v2677_v9, %v553_v60  ;;  %v872_v11 = vsel %vm857_vm3, %v852_v61, 0.0  ;;  %v2786_v12 = vpop.permute.xlu1 %787 }
  0xd3   : > { %v585_v13 = vmul.f32 %v575_v62, %v558_v8  ;;  %v2789_v14 = vmul.f32 %v2781_v63, %v872_v11 }
  0xd5   : > { %1067 = vmatpush.msra.mxu3 %v585_v13  ;;  %v817_v13 = vsel %vm801_vm4, %v2742_v42, 0.0 }
  0xd7   : > { %685 = vrot.lane.b32.xlu0 %v2585_v1, %s2418_s11 }
  0xd8   : > { %677 = vrot.lane.b32.xlu2 %v2587_v2, %s2418_s11  ;;  %681 = vrot.lane.b32.xlu1 %v2595_v3, %s2418_s11 }
  0xd9   : > { %v549_v16 = vpop.permute.xlu0 %548  ;;  %v2797_v9 = vpop.permute.xlu2 %735 }
  0xda   : > { %v557_v18 = vsel %vm554_vm1, %v2685_v10, %v549_v16  ;;  %v2803_v19 = vpop.permute.xlu1 %743 }
  0xdb   : > { %v583_v20 = vmul.f32 %v575_v62, %v557_v18 }
  0xdd   : > { %1068 = vmatpush.msra.mxu3 %v583_v20  ;;  %v816_v20 = vsel %vm801_vm4, %v2758_v52, 0.0 }
  0xdf   : > { %673 = vrot.lane.b32.xlu0 %v2597_v4, %s2418_s11  ;;  %1069 = vmatpush.msra.mxu3 %v581_v21 }
  0xe1   : > { %v856_v24 = vpop.permute.xlu0 %855  ;;  %v2809_v15 = vpop.permute.xlu2 %482 }
  0xe2   : > { %v873_v25 = vsel %vm857_vm3, %v856_v24, 0.0  ;;  %v491_v26 = vpop.permute.xlu1 %490  ;;  %v861_v27 = vsel %vm857_vm3, %v854_v50, %v856_v24  ;;  %v511_v37 = vsel %vm498_vm2, 0.0, %v2809_v15 }
  0xe3   : > { %v513_v10 = vsel %vm498_vm2, 0.0, %v491_v26  ;;  %v887_v28 = vmul.f32 %v877_v22, %v861_v27  ;;  %v2813_v29 = vmul.f32 %v2781_v63, %v873_v25  ;;  %v522_v46 = vmul.f32 %v2746_v45, %v511_v37 }
  0xe4   : > { %v526_v30 = vmul.f32 %v2746_v45, %v513_v10  ;;  %v815_v10 = vsel %vm801_vm4, %v2768_v57, 0.0 }
  0xe5   : > { %1052 = vmatpush.msra.mxu2 %v887_v28  ;;  %v2873_v28 = vld [vmem:[%s3402_s1 + $0x6] ss:$8 sm:$0x3] }
  0xe6   : > { %1003 = vmatpush.msra.mxu0 %v526_v30 }
  0xe9   : > { %v2816_v31 = vpop.permute.xlu0 %739  ;;  %v842_v35 = vpop.permute.xlu2 %841 }
  0xea   : > { %v850_v32 = vpop.permute.xlu1 %849 }
  0xeb   : > { %v860_v33 = vsel %vm857_vm3, %v850_v32, %v852_v61 }
  0xec   : > { %v885_v34 = vmul.f32 %v877_v22, %v860_v33  ;;  %v766_v33 = vperm.slane %v2873_v28, 1 }
  0xee   : > { %1053 = vmatpush.msra.mxu2 %v885_v34  ;;  %v761_v34 = vsel %vm745_vm6, %v2803_v19, 0.0 }
  0xf1   : > { %v487_v39 = vpop.permute.xlu0 %486  ;;  %v493_v48 = vpop.permute.xlu2 %492 }
  0xf2   : > { %v512_v40 = vsel %vm498_vm2, 0.0, %v487_v39  ;;  %v541_v41 = vpop.permute.xlu1 %540 }
  0xf3   : > { %v555_v43 = vsel %vm554_vm1, %v2714_v23, %v541_v41  ;;  %v524_v44 = vmul.f32 %v2746_v45, %v512_v40  ;;  %v2831_v23 = vperm.slane %v2735_v36, 1  ;;  %v501_v45 = vsel %vm498_vm2, %v491_v26, %v493_v48  ;;  %v2847_v36 = vld [vmem:[%s3402_s1] ss:$8 sm:$0x3] }
  0xf4   : > { %v579_v47 = vmul.f32 %v575_v62, %v555_v43  ;;  %v2117_v62 = vld [vmem:[%s3402_s1 + $0x7] ss:$8 sm:$0x3]  ;;  %v2851_v11 = vperm.slane %v2847_v36, 0  ;;  %v760_v41 = vsel %vm745_vm6, %v2816_v31, 0.0  ;;  %v759_v48 = vsel %vm745_vm6, %v2797_v9, 0.0 }
  0xf5   : > { %1004 = vmatpush.msra.mxu0 %v524_v44  ;;  %v527_v61 = vmul.f32 %v2831_v23, %v501_v45  ;;  %v822_v8 = vperm.slane %v2117_v62, 1  ;;  %v776_v44 = vmul.f32 %v766_v33, %v761_v34  ;;  %v2927_v34 = vld [vmem:[#allocation6 + $0x10] sm:$0xff] }
  0xf6   : > { %1070 = vmatpush.msra.mxu3 %v579_v47 }
  0xf7   : > { %1005 = vmatpush.msra.mxu0 %v522_v46  ;;  %v832_v26 = vmul.f32 %v822_v8, %v817_v13  ;;  %v830_v30 = vmul.f32 %v822_v8, %v816_v20  ;;  %v828_v32 = vmul.f32 %v822_v8, %v815_v10 }
  0xf9   : > { %v846_v49 = vpop.permute.xlu0 %845  ;;  %v489_v54 = vpop.permute.xlu2 %488 }
  0xfa   : > { %v2826_v50 = vpop.permute.xlu1 %847  ;;  %v500_v60 = vsel %vm498_vm2, %v487_v39, %v489_v54 }
  0xfb   : > { %v859_v51 = vsel %vm857_vm3, %v846_v49, %v2826_v50  ;;  %v2897_v49 = vld [vmem:[%s3402_s1 + $0x5] ss:$8 sm:$0x3] }
  0xfc   : > { %v883_v53 = vmul.f32 %v877_v22, %v859_v51  ;;  %v710_v45 = vperm.slane %v2897_v49, 1 }
  0xfe   : > { %1054 = vmatpush.msra.mxu2 %v883_v53  ;;  %v774_v53 = vmul.f32 %v766_v33, %v760_v41 }
 0x101   : > { %v497_v55 = vpop.permute.xlu0 %496  ;;  %v2865_v25 = vpop.permute.xlu2 %431 }
 0x102   : > { %v502_v56 = vsel %vm498_vm2, %v2737_v38, %v497_v55  ;;  %v2836_v58 = vpop.permute.xlu1 %731  ;;  %v525_v38 = vmul.f32 %v2831_v23, %v500_v60  ;;  %v772_v55 = vmul.f32 %v766_v33, %v759_v48 }
 0x103   : > { %v529_v59 = vmul.f32 %v2831_v23, %v502_v56  ;;  %v758_v54 = vsel %vm745_vm6, %v2836_v58, 0.0 }
 0x105   : > { %1071 = vmatpush.msra.mxu3 %v529_v59 }
 0x107   : > { %1072 = vmatpush.msra.mxu3 %v527_v61  ;;  %v770_v61 = vmul.f32 %v766_v33, %v758_v54 }
 0x109   : > { %v2855_v16 = vpop.permute.xlu0 %843  ;;  %1073 = vmatpush.msra.mxu3 %v525_v38  ;;  %v794_v51 = vpop.permute.xlu2 %793  ;;  %v2906_v38 = vperm.slane %v2117_v62, 0 }
 0x10a   : > { %v858_v17 = vsel %vm857_vm3, %v842_v35, %v2855_v16  ;;  %v2859_v18 = vpop.permute.xlu1 %439  ;;  %v457_v35 = vsel %vm443_vm5, 0.0, %v2865_v25 }
 0x10b   : > { %v459_v21 = vsel %vm443_vm5, 0.0, %v2859_v18  ;;  %v881_v24 = vmul.f32 %v877_v22, %v858_v17  ;;  %v814_v22 = vsel %vm801_vm4, %v2786_v12, 0.0  ;;  %v468_v47 = vmul.f32 %v2851_v11, %v457_v35 }
 0x10c   : > { %v472_v27 = vmul.f32 %v2851_v11, %v459_v21  ;;  %v826_v40 = vmul.f32 %v822_v8, %v814_v22  ;;  %v804_v8 = vsel %vm801_vm4, %v794_v51, %v2758_v52  ;;  %v463_v35 = vperm.slane %v2847_v36, 1  ;;  %v897_v51 = vld [vmem:[#allocation6] sm:$0xff] }
 0x10d   : > { %1055 = vmatpush.msra.mxu2 %v881_v24  ;;  %v829_v24 = vmul.f32 %v2906_v38, %v804_v8  ;;  %v871_v36 = vsel %vm857_vm3, %v2826_v50, 0.0  ;;  %v2966_v8 = vld [vmem:[#allocation6 + $0x8] sm:$0xff] }
 0x10e   : > { %1006 = vmatpush.msra.mxu0 %v472_v27  ;;  %2119 = vmatmul.msk.f32.vlgmr.msra.gmra.mxu2 %vm987_vm8, %v2927_v34  ;;  %v884_v50 = vmul.f32 %v2781_v63, %v871_v36 }
 0x10f   : > { %1086 = vmatpush.msrb.mxu2 %v832_v26 }
 0x111   : > { %1087 = vmatpush.msrb.mxu2 %v830_v30  ;;  %v2882_v37 = vpop.permute.xlu0 %687 }
 0x112   : > { %v2884_v39 = vpop.permute.xlu1 %435  ;;  %v705_v56 = vsel %vm689_vm7, %v2882_v37, 0.0  ;;  %v2916_v62 = vpop.permute.xlu2 %675 }
 0x113   : > { %1088 = vmatpush.msrb.mxu2 %v828_v32  ;;  %v458_v43 = vsel %vm443_vm5, 0.0, %v2884_v39  ;;  %v720_v21 = vmul.f32 %v710_v45, %v705_v56  ;;  %v702_v52 = vsel %vm689_vm7, %v2916_v62, 0.0 }
 0x114   : > { %v470_v46 = vmul.f32 %v2851_v11, %v458_v43  ;;  %v714_v33 = vmul.f32 %v710_v45, %v702_v52 }
 0x115   : > { %1089 = vmatpush.msrb.mxu2 %v826_v40 }
 0x116   : > { %1007 = vmatpush.msra.mxu0 %v470_v46  ;;  %v2939_v46 = vld [vmem:[%s3402_s1 + $0x4] ss:$8 sm:$0x3] }
 0x117   : > { %1090 = vmatpush.msrb.mxu2 %v776_v44  ;;  %v654_v48 = vperm.slane %v2939_v46, 1 }
 0x118   : > { %1008 = vmatpush.msra.mxu0 %v468_v47 }
 0x119   : > { %1091 = vmatpush.msrb.mxu2 %v774_v53  ;;  %v2904_v59 = vpop.permute.xlu0 %683  ;;  %v2944_v53 = vld [vmem:[#allocation6 + $0x28] sm:$0xff]  ;;  %v662_v54 = vmul.f32 %v654_v48, %v2605_v5  ;;  %v660_v56 = vmul.f32 %v654_v48, %v2613_v6 }
 0x11a   : > { %v798_v60 = vpop.permute.xlu1 %797  ;;  %v704_v13 = vsel %vm689_vm7, %v2904_v59, 0.0  ;;  %v786_v43 = vpop.permute.xlu2 %785  ;;  %2120 = vmatmul.msk.f32.gmra.mxu2 %vm987_vm8, %v2944_v53 }
 0x11b   : > { %1092 = vmatpush.msrb.mxu2 %v772_v55  ;;  %v805_v17 = vsel %vm801_vm4, %v798_v60, %v2742_v42  ;;  %v718_v26 = vmul.f32 %v710_v45, %v704_v13 }
 0x11c   : > { %v831_v20 = vmul.f32 %v2906_v38, %v805_v17  ;;  %v765_v17 = vperm.slane %v2873_v28, 0 }
 0x11d   : > { %1093 = vmatpush.msrb.mxu2 %v770_v61 }
 0x11e   : > { %1017 = vmatpush.msra.mxu1 %v831_v20 }
 0x11f   : > { %1094 = vmatpush.msrb.mxu2 %v720_v21 }
 0x120   : > { %1018 = vmatpush.msra.mxu1 %v829_v24 }
 0x121   : > { %1095 = vmatpush.msrb.mxu2 %v718_v26  ;;  %v485_v27 = vpop.permute.xlu0 %484  ;;  %v901_v26 = vld [vmem:[#allocation6 + $0x20] sm:$0xff] }
 0x122   : > { %v499_v42 = vsel %vm498_vm2, %v2809_v15, %v485_v27  ;;  %v2922_v10 = vpop.permute.xlu1 %679  ;;  %v430_v61 = vpop.permute.xlu2 %429 }
 0x123   : > { %v703_v30 = vsel %vm689_vm7, %v2922_v10, 0.0  ;;  %v523_v22 = vmul.f32 %v2831_v23, %v499_v42 }
 0x124   : > { %v716_v32 = vmul.f32 %v710_v45, %v703_v30 }
 0x125   : > { %1074 = vmatpush.msra.mxu3 %v523_v22 }
 0x126   : > { %1096 = vmatpush.msrb.mxu2 %v716_v32  ;;  %v976_v32 = vld [vmem:[%s3404_s3 + $0x8] sm:$0xff] }
 0x128   : > { %1097 = vmatpush.msrb.mxu2 %v714_v33 }
 0x129   : > { %v428_v15 = vpop.permute.xlu0 %427 }
 0x12a   : > { %v456_v40 = vsel %vm443_vm5, 0.0, %v428_v15  ;;  %v442_v41 = vpop.permute.xlu1 %441  ;;  %v730_v52 = vpop.permute.xlu2 %729 }
 0x12b   : > { %v447_v23 = vsel %vm443_vm5, %v2859_v18, %v442_v41  ;;  %v466_v44 = vmul.f32 %v2851_v11, %v456_v40  ;;  %v870_v18 = vsel %vm857_vm3, %v2855_v16, 0.0  ;;  %v664_v11 = vmul.f32 %v654_v48, %v2583_v0 }
 0x12c   : > { %v473_v47 = vmul.f32 %v463_v35, %v447_v23  ;;  %v882_v45 = vmul.f32 %v2781_v63, %v870_v18  ;;  %v802_v16 = vsel %vm801_vm4, %v786_v43, %v2786_v12  ;;  %v658_v63 = vmul.f32 %v654_v48, %v2621_v7 }
 0x12d   : > { %1009 = vmatpush.msra.mxu0 %v466_v44  ;;  %1098 = vmatpush.msrb.mxu2 %v664_v11  ;;  %v825_v12 = vmul.f32 %v2906_v38, %v802_v16  ;;  %v746_v30 = vsel %vm745_vm6, %v730_v52, %v2836_v58  ;;  %v1440_v52 = vld [vmem:[%s3406_s5] sm:$0xff] }
 0x12e   : > { %1075 = vmatpush.msra.mxu3 %v473_v47  ;;  %1010 = vmatmul.f32.vlgmr.msra.gmra.mxu0 %v897_v51  ;;  %v769_v33 = vmul.f32 %v765_v17, %v746_v30 }
 0x12f   : > { %1121 = vmatpush.msrb.mxu0 %v2813_v29  ;;  %1099 = vmatpush.msrb.mxu2 %v662_v54 }
 0x131   : > { %1122 = vmatpush.msrb.mxu0 %v2789_v14  ;;  %v790_v55 = vpop.permute.xlu0 %789  ;;  %1100 = vmatpush.msrb.mxu2 %v660_v56 }
 0x132   : > { %v803_v0 = vsel %vm801_vm4, %v790_v55, %v2768_v57  ;;  %v438_v29 = vpop.permute.xlu1 %437  ;;  %v900_v57 = vld [vmem:[#allocation6 + $0x18] sm:$0xff] }
 0x133   : > { %1123 = vmatpush.msrb.mxu0 %v884_v50  ;;  %v446_v14 = vsel %vm443_vm5, %v2884_v39, %v438_v29  ;;  %v827_v60 = vmul.f32 %v2906_v38, %v803_v0  ;;  %1101 = vmatpush.msrb.mxu2 %v658_v63  ;;  %v444_v39 = vsel %vm443_vm5, %v428_v15, %v430_v61 }
 0x134   : > { %v471_v5 = vmul.f32 %v463_v35, %v446_v14  ;;  %1102 = vmatmul.f32.vlgmr.msrb.gmra.mxu2 %v2966_v8  ;;  %v467_v24 = vmul.f32 %v463_v35, %v444_v39 }
 0x135   : > { %1124 = vmatpush.msrb.mxu0 %v882_v45  ;;  %1019 = vmatpush.msra.mxu1 %v827_v60 }
 0x136   : > { %1076 = vmatpush.msra.mxu3 %v471_v5  ;;  %1013 = vmatmul.f32.gmra.mxu0 %v900_v57 }
 0x137   : > { %1020 = vmatpush.msra.mxu1 %v825_v12 }
 0x139   : > { %v434_v6 = vpop.permute.xlu0 %433 }
 0x13a   : > { %v445_v13 = vsel %vm443_vm5, %v2865_v25, %v434_v6  ;;  %v742_v7 = vpop.permute.xlu1 %741 }
 0x13b   : > { %v749_v38 = vsel %vm745_vm6, %v742_v7, %v2803_v19  ;;  %v469_v20 = vmul.f32 %v463_v35, %v445_v13  ;;  %v709_v35 = vperm.slane %v2897_v49, 0  ;;  %v653_v49 = vperm.slane %v2939_v46, 0 }
 0x13c   : > { %v775_v21 = vmul.f32 %v765_v17, %v749_v38  ;;  %1105 = vmatmul.f32.gmra.mxu2 %v901_v26 }
 0x13d   : > { %1077 = vmatpush.msra.mxu3 %v469_v20 }
 0x13e   : > { %1021 = vmatpush.msra.mxu1 %v775_v21  ;;  %2121 = vmatmul.msk.f32.vlgmr.msrb.gmra.mxu0 %vm987_vm8, %v2927_v34  ;;  %v678_v34 = vpop.permute.xlu2 %677 }
 0x13f   : > { %1078 = vmatpush.msra.mxu3 %v467_v24  ;;  %v691_v23 = vsel %vm689_vm7, %v678_v34, %v2922_v10  ;;  %v659_v10 = vmul.f32 %v653_v49, %v2587_v2 }
 0x140   : > { %1079 = vmatmul.f32.vlgmr.msra.gmra.mxu3 %v897_v51  ;;  %v715_v47 = vmul.f32 %v709_v35, %v691_v23  ;;  %v663_v51 = vmul.f32 %v653_v49, %v2585_v1 }
 0x141   : > { %v738_v25 = vpop.permute.xlu0 %737 }
 0x142   : > { %v748_v28 = vsel %vm745_vm6, %v738_v25, %v2816_v31  ;;  %v734_v27 = vpop.permute.xlu1 %733  ;;  %v2419_v31 = vmov 0  }
 0x143   : > { %v747_v19 = vsel %vm745_vm6, %v734_v27, %v2797_v9  ;;  %v773_v42 = vmul.f32 %v765_v17, %v748_v28  ;;  %2240 = vset.pattern.permute.xlu1 %v2419_v31  ;;  %v975_v9 = vld [vmem:[%s3404_s3] sm:$0xff]  ;;  %2241 = vset.pattern.permute.xlu2 %v2419_v31 }
 0x144   : > { %v771_v22 = vmul.f32 %v765_v17, %v747_v19  ;;  %984 = vperm.xlu1 %2240, %v976_v32   ;;  %2242 = vset.pattern.permute.xlu0 %v2419_v31 }
 0x145   : > { %1022 = vmatpush.msra.mxu1 %v773_v42  ;;  %979 = vperm.xlu2 %2241, %v975_v9  }
 0x146   : > { %2122 = vmatmul.msk.f32.gmra.mxu0 %vm987_vm8, %v2944_v53  ;;  %v657_v53 = vmul.f32 %v653_v49, %v2597_v4 }
 0x147   : > { %1023 = vmatpush.msra.mxu1 %v771_v22 }
 0x148   : > { %1082 = vmatmul.f32.gmra.mxu3 %v900_v57 }
 0x149   : > { %v686_v58 = vpop.permute.xlu0 %685  ;;  %1024 = vmatpush.msra.mxu1 %v769_v33 }
 0x14a   : > { %v693_v15 = vsel %vm689_vm7, %v686_v58, %v2882_v37  ;;  %v682_v40 = vpop.permute.xlu1 %681 }
 0x14b   : > { %v692_v41 = vsel %vm689_vm7, %v682_v40, %v2904_v59  ;;  %v719_v43 = vmul.f32 %v709_v35, %v693_v15  ;;  %v661_v59 = vmul.f32 %v653_v49, %v2595_v3 }
 0x14c   : > { %v717_v44 = vmul.f32 %v709_v35, %v692_v41  ;;  %v2129_v41 = vld [vmem:[%s3402_s1 + $0x7] ss:$8 sm:$0x3] }
 0x14d   : > { %1025 = vmatpush.msra.mxu1 %v719_v43  ;;  %v1361_v43 = vperm.slane %v2129_v41, 1  ;;  %v1360_v23 = vperm.slane %v2129_v41, 0 }
 0x14f   : > { %1026 = vmatpush.msra.mxu1 %v717_v44 }
 0x151   : > { %v674_v48 = vpop.permute.xlu0 %673  ;;  %1027 = vmatpush.msra.mxu1 %v715_v47 }
 0x152   : > { %v690_v37 = vsel %vm689_vm7, %v674_v48, %v2916_v62 }
 0x153   : > { %v713_v36 = vmul.f32 %v709_v35, %v690_v37 }
 0x155   : > { %1028 = vmatpush.msra.mxu1 %v713_v36 }
 0x157   : > { %1029 = vmatpush.msra.mxu1 %v663_v51 }
 0x159   : > { %1030 = vmatpush.msra.mxu1 %v661_v59  ;;  %v2128_v59 = vld [vmem:[%s3402_s1 + $0x6] ss:$8 sm:$0x3] }
 0x15b   : > { %1031 = vmatpush.msra.mxu1 %v659_v10 }
 0x15d   : > { %1032 = vmatpush.msra.mxu1 %v657_v53 }
 0x15e   : > { %1033 = vmatmul.f32.vlgmr.msra.gmra.mxu1 %v2966_v8 }
 0x166   : > { %1036 = vmatmul.f32.gmra.mxu1 %v901_v26 }
 0x191   : > { %v1057_v46 = vpop.f32.mrf.mxu2 }
 0x19d   : > { %v1060_v50 = vpop.f32.mrf.mxu2 }
 0x19f   : > { %v980_v62 = vpop.permute.xlu2 %979 }
 0x1ab   : > { %v1011_v18 = vpop.f32.mrf.mxu0 }
 0x1ac   : > { %v1012_v11 = vadd.f32 %v1011_v18, %v980_v62 }
 0x1b3   : > { %v1014_v55 = vpop.f32.mrf.mxu0 }
 0x1b6   : > { %v985_v16 = vpop.permute.xlu1 %984 }
 0x1b7   : > { %v1015_v0 = vadd.f32 %v1014_v55, %v985_v16  ;;  %v1103_v56 = vpop.f32.mrf.mxu2  ;;  %v1330_v55 = vperm.slane %v2128_v59, 0 }
 0x1bb   : > { %v1126_v61 = vpop.f32.mrf.mxu0 }
 0x1bf   : > { %v1106_v17 = vpop.f32.mrf.mxu2 }
 0x1c3   : > { %v1080_v45 = vpop.f32.mrf.mxu3  ;;  %v1129_v20 = vpop.f32.mrf.mxu0 }
 0x1c4   : > { %v1081_v4 = vadd.f32 %v1080_v45, %v980_v62 }
 0x1c6   : > { %v1104_v5 = vadd.f32 %v1103_v56, %v1081_v4 }
 0x1c8   : > { %v1127_v57 = vadd.f32 %v1126_v61, %v1104_v5 }
 0x1ca   : > { %v1137_v6 = vmul.f32 0.2, %v1127_v57  ;;  %vm1133_vm11 = vcmp.ge.f32.partialorder %v1127_v57, 0.0 }
 0x1cb   : > { %v1083_v13 = vpop.f32.mrf.mxu3 }
 0x1cc   : > { %v3022_v39 = vsel %vm1133_vm11, %v1127_v57, %v1137_v6  ;;  %v1084_v7 = vadd.f32 %v1083_v13, %v985_v16 }
 0x1ce   : > { %v1107_v38 = vadd.f32 %v1106_v17, %v1084_v7  ;;  %v2126_v7 = vld [vmem:[%s3402_s1 + $0x4] ss:$8 sm:$0x3] }
 0x1d0   : > { %v1130_v21 = vadd.f32 %v1129_v20, %v1107_v38 }
 0x1d2   : > { %v1139_v24 = vmul.f32 0.2, %v1130_v21  ;;  %vm1135_vm12 = vcmp.ge.f32.partialorder %v1130_v21, 0.0 }
 0x1d4   : > { %v3042_v26 = vsel %vm1135_vm12, %v1130_v21, %v1139_v24  ;;  %v1270_v24 = vperm.slane %v2126_v7, 0 }
 0x1db   : > { %v1034_v1 = vpop.f32.mrf.mxu1 }
 0x1dc   : > { %v1035_v54 = vadd.f32 %v1034_v1, %v1012_v11 }
 0x1de   : > { %v1058_v3 = vadd.f32 %v1057_v46, %v1035_v54 }
 0x1e0   : > { %vm1132_vm9 = vcmp.ge.f32.partialorder %v1058_v3, 0.0  ;;  %v1136_v2 = vmul.f32 0.2, %v1058_v3 }
 0x1e2   : > { %v3006_v29 = vsel %vm1132_vm9, %v1058_v3, %v1136_v2 }
 0x1e3   : > { %v1037_v14 = vpop.f32.mrf.mxu1  ;;  %1372 = vrot.lane.b32.xlu0 %v3006_v29, %s2415_s25  ;;  %1238 = vrot.lane.b32.xlu2 %v3006_v29, %s2411_s2 }
 0x1e4   : > { %v1038_v60 = vadd.f32 %v1037_v14, %v1015_v0  ;;  %1342 = vrot.lane.b32.xlu1 %v3006_v29, %s2413_s19  ;;  %v2127_v0 = vld [vmem:[%s3402_s1 + $0x5] ss:$8 sm:$0x3] }
 0x1e5   : > { %v1301_v5 = vperm.slane %v2127_v0, 1  ;;  %v1300_v61 = vperm.slane %v2127_v0, 0 }
 0x1e6   : > { %v1061_v63 = vadd.f32 %v1060_v50, %v1038_v60  ;;  %v1331_v50 = vperm.slane %v2128_v59, 1 }
 0x1e8   : > { %vm1134_vm10 = vcmp.ge.f32.partialorder %v1061_v63, 0.0  ;;  %v1138_v12 = vmul.f32 0.2, %v1061_v63 }
 0x1ea   : > { %v3014_v8 = vsel %vm1134_vm10, %v1061_v63, %v1138_v12 }
 0x1eb   : > { %1346 = vrot.lane.b32.xlu0 %v3014_v8, %s2413_s19  ;;  %1208 = vrot.lane.b32.xlu2 %v3006_v29, %s2412_s4 }
 0x1ec   : > { %1312 = vrot.lane.b32.xlu1 %v3006_v29, %s2416_s22 }
 0x1f3   : > { %1314 = vrot.lane.b32.xlu0 %v3022_v39, %s2416_s22  ;;  %1242 = vrot.lane.b32.xlu2 %v3014_v8, %s2411_s2 }
 0x1f4   : > { %1282 = vrot.lane.b32.xlu1 %v3006_v29, %s2418_s11 }
 0x1fb   : > { %1240 = vrot.lane.b32.xlu0 %v3022_v39, %s2411_s2  ;;  %1212 = vrot.lane.b32.xlu2 %v3014_v8, %s2412_s4 }
 0x1fc   : > { %1316 = vrot.lane.b32.xlu1 %v3014_v8, %s2416_s22 }
 0x203   : > { %1210 = vrot.lane.b32.xlu0 %v3022_v39, %s2412_s4  ;;  %1376 = vrot.lane.b32.xlu2 %v3014_v8, %s2415_s25 }
 0x204   : > { %1286 = vrot.lane.b32.xlu1 %v3014_v8, %s2418_s11 }
 0x20b   : > { %1348 = vrot.lane.b32.xlu0 %v3042_v26, %s2413_s19  ;;  %1284 = vrot.lane.b32.xlu2 %v3022_v39, %s2418_s11 }
 0x20c   : > { %1182 = vrot.lane.b32.xlu1 %v3014_v8, %s2414_s24 }
 0x213   : > { %1180 = vrot.lane.b32.xlu0 %v3022_v39, %s2414_s24  ;;  %1318 = vrot.lane.b32.xlu2 %v3042_v26, %s2416_s22 }
 0x214   : > { %1344 = vrot.lane.b32.xlu1 %v3022_v39, %s2413_s19 }
 0x21b   : > { %1244 = vrot.lane.b32.xlu0 %v3042_v26, %s2411_s2  ;;  %1178 = vrot.lane.b32.xlu2 %v3006_v29, %s2414_s24 }
 0x21c   : > { %1288 = vrot.lane.b32.xlu1 %v3042_v26, %s2418_s11 }
 0x223   : > { %1214 = vrot.lane.b32.xlu0 %v3042_v26, %s2412_s4  ;;  %1184 = vrot.lane.b32.xlu2 %v3042_v26, %s2414_s24 }
 0x224   : > { %1374 = vrot.lane.b32.xlu1 %v3022_v39, %s2415_s25 }
 0x22b   : > { %1378 = vrot.lane.b32.xlu0 %v3042_v26, %s2415_s25  ;;  %1154 = vrot.lane.b32.xlu2 %v3042_v26, %s2417_s30 }
 0x22c   : > { %1152 = vrot.lane.b32.xlu1 %v3014_v8, %s2417_s30 }
 0x233   : > { %1148 = vrot.lane.b32.xlu0 %v3006_v29, %s2417_s30  ;;  %1443 = vperm.xlu2 %2241, %v1440_v52   ;;  %v1271_v52 = vperm.slane %v2126_v7, 1 }
 0x234   : > { %1150 = vrot.lane.b32.xlu1 %v3022_v39, %s2417_s30 }
 0x23d   : > { %v3081_v25 = vpop.permute.xlu2 %1238 }
 0x245   : > { %v3083_v28 = vpop.permute.xlu2 %1208 }
 0x24d   : > { %v3087_v42 = vpop.permute.xlu2 %1242 }
 0x255   : > { %v3085_v27 = vpop.permute.xlu0 %1372  ;;  %v3089_v32 = vpop.permute.xlu2 %1212 }
 0x256   : > { %v1343_v19 = vpop.permute.xlu1 %1342 }
 0x25d   : > { %v1347_v30 = vpop.permute.xlu0 %1346  ;;  %v3093_v34 = vpop.permute.xlu2 %1376 }
 0x25e   : > { %v1313_v22 = vpop.permute.xlu1 %1312 }
 0x265   : > { %v1315_v33 = vpop.permute.xlu0 %1314  ;;  %v1285_v40 = vpop.permute.xlu2 %1284 }
 0x266   : > { %v1283_v31 = vpop.permute.xlu1 %1282  ;;  %v1320_v3 = vsel %vm745_vm6, %v1313_v22, %v1315_v33  ;;  %v1326_v45 = vsel %vm745_vm6, %v1315_v33, 0.0  ;;  %v1296_v12 = vsel %vm689_vm7, %v1285_v40, 0.0  ;;  %v1277_v22 = vmul.f32 %v1271_v52, %v3042_v26 }
 0x267   : > { %v1335_v4 = vmul.f32 %v1331_v50, %v1326_v45  ;;  %v1334_v14 = vmul.f32 %v1330_v55, %v1320_v3  ;;  %v1290_v57 = vsel %vm689_vm7, %v1283_v31, %v1285_v40  ;;  %v1305_v20 = vmul.f32 %v1301_v5, %v1296_v12  ;;  %v2124_v40 = vld [vmem:[%s3402_s1 + $0x2] ss:$8 sm:$0x3] }
 0x268   : > { %v1304_v21 = vmul.f32 %v1300_v61, %v1290_v57  ;;  %v1253_v33 = vsel %vm610_vm0, 0.0, %v3087_v42  ;;  %v1275_v26 = vmul.f32 %v1271_v52, %v3022_v39  ;;  %v1222_v39 = vsel %vm554_vm1, 0.0, %v3083_v28 }
 0x269   : > { %v1227_v59 = vperm.slane %v2124_v40, 1 }
 0x26d   : > { %v3091_v9 = vpop.permute.xlu0 %1240  ;;  %v1319_v51 = vpop.permute.xlu2 %1318 }
 0x26e   : > { %v1317_v58 = vpop.permute.xlu1 %1316  ;;  %v1327_v46 = vsel %vm745_vm6, %v1319_v51, 0.0 }
 0x26f   : > { %v1321_v18 = vsel %vm745_vm6, %v1317_v58, %v1319_v51  ;;  %v1337_v16 = vmul.f32 %v1331_v50, %v1327_v46 }
 0x270   : > { %v1336_v2 = vmul.f32 %v1330_v55, %v1321_v18 }
 0x275   : > { %v3095_v35 = vpop.permute.xlu0 %1210  ;;  %v3118_v56 = vpop.permute.xlu2 %1178 }
 0x276   : > { %v1287_v15 = vpop.permute.xlu1 %1286 }
 0x27d   : > { %v1349_v44 = vpop.permute.xlu0 %1348  ;;  %v1185_v41 = vpop.permute.xlu2 %1184 }
 0x27e   : > { %v1351_v47 = vsel %vm801_vm4, %v1347_v30, %v1349_v44  ;;  %v1357_v49 = vsel %vm801_vm4, %v1349_v44, 0.0  ;;  %v3102_v48 = vpop.permute.xlu1 %1182  ;;  %v1276_v30 = vmul.f32 %v1270_v24, %v3014_v8  ;;  %v1274_v8 = vmul.f32 %v1270_v24, %v3006_v29 }
 0x27f   : > { %v1367_v37 = vmul.f32 %v1361_v43, %v1357_v49  ;;  %v1366_v36 = vmul.f32 %v1360_v23, %v1351_v47  ;;  %v1252_v44 = vsel %vm610_vm0, 0.0, %v3081_v25  ;;  %v1193_v50 = vsel %vm498_vm2, 0.0, %v3102_v48 }
 0x281   : > { %1449 = vmatpush.msrb.mxu1 %v1366_v36  ;;  %1489 = vmatpush.msra.mxu2 %v1367_v37  ;;  %v1223_v37 = vsel %vm554_vm1, 0.0, %v3089_v32  ;;  %v1226_v36 = vperm.slane %v2124_v40, 0 }
 0x285   : > { %v3107_v10 = vpop.permute.xlu0 %1180 }
 0x286   : > { %v1345_v53 = vpop.permute.xlu1 %1344  ;;  %v1186_v0 = vsel %vm498_vm2, %v3118_v56, %v3107_v10 }
 0x287   : > { %v1350_v62 = vsel %vm801_vm4, %v1343_v19, %v1345_v53  ;;  %v1356_v11 = vsel %vm801_vm4, %v1345_v53, 0.0  ;;  %v2125_v19 = vld [vmem:[%s3402_s1 + $0x3] ss:$8 sm:$0x3]  ;;  %v1216_v53 = vsel %vm554_vm1, %v3083_v28, %v3095_v35  ;;  %v1230_v35 = vmul.f32 %v1226_v36, %v1222_v39 }
 0x288   : > { %v1365_v1 = vmul.f32 %v1361_v43, %v1356_v11  ;;  %v1364_v54 = vmul.f32 %v1360_v23, %v1350_v62  ;;  %v1256_v23 = vperm.slane %v2125_v19, 0  ;;  %v1232_v62 = vmul.f32 %v1226_v36, %v1223_v37  ;;  %v1164_v28 = vld [vmem:[%s3402_s1] ss:$8 sm:$0x3] }
 0x289   : > { %v1187_v11 = vsel %vm498_vm2, %v3102_v48, %v1185_v41  ;;  %v1231_v55 = vmul.f32 %v1227_v59, %v1216_v53  ;;  %v1192_v48 = vsel %vm498_vm2, 0.0, %v3118_v56  ;;  %v1166_v12 = vperm.slane %v1164_v28, 0  ;;  %v1403_v56 = vld [vmem:[#allocation8 + $0x8] sm:$0xff] }
 0x28a   : > { %1450 = vmatpush.msrb.mxu1 %v1364_v54  ;;  %1490 = vmatpush.msra.mxu2 %v1365_v1  ;;  %v1262_v49 = vmul.f32 %v1256_v23, %v1253_v33  ;;  %v1402_v33 = vld [vmem:[#allocation8] sm:$0xff] }
 0x28c   : > { %1451 = vmatpush.msrb.mxu1 %v1336_v2  ;;  %1491 = vmatpush.msra.mxu2 %v1337_v16 }
 0x28d   : > { %v1245_v60 = vpop.permute.xlu0 %1244 }
 0x28e   : > { %1452 = vmatpush.msrb.mxu1 %v1334_v14  ;;  %1492 = vmatpush.msra.mxu2 %v1335_v4  ;;  %v1289_v63 = vpop.permute.xlu1 %1288  ;;  %v1247_v31 = vsel %vm610_vm0, %v3087_v42, %v1245_v60  ;;  %v1246_v42 = vsel %vm610_vm0, %v3081_v25, %v3091_v9  ;;  %v2130_v25 = vld [vmem:[%s3402_s1 + $0x10] ss:$8 sm:$0x3]  ;;  %v1260_v9 = vmul.f32 %v1256_v23, %v1252_v44  ;;  %v1155_v60 = vpop.permute.xlu2 %1154 }
 0x28f   : > { %v1291_v6 = vsel %vm689_vm7, %v1287_v15, %v1289_v63  ;;  %v1297_v13 = vsel %vm689_vm7, %v1289_v63, 0.0  ;;  %v1257_v15 = vperm.slane %v2125_v19, 1  ;;  %v1390_v54 = vperm.slane %v2130_v25, 0 }
 0x290   : > { %v1307_v17 = vmul.f32 %v1301_v5, %v1297_v13  ;;  %v1306_v38 = vmul.f32 %v1300_v61, %v1291_v6  ;;  %v1167_v5 = vperm.slane %v1164_v28, 1  ;;  %v1391_v6 = vperm.slane %v2130_v25, 1 }
 0x291   : > { %v1263_v47 = vmul.f32 %v1257_v15, %v1247_v31  ;;  %v1261_v51 = vmul.f32 %v1257_v15, %v1246_v42 }
 0x292   : > { %1453 = vmatpush.msrb.mxu1 %v1306_v38  ;;  %1493 = vmatpush.msra.mxu2 %v1307_v17 }
 0x294   : > { %1454 = vmatpush.msrb.mxu1 %v1304_v21  ;;  %1494 = vmatpush.msra.mxu2 %v1305_v20 }
 0x295   : > { %v1215_v58 = vpop.permute.xlu0 %1214 }
 0x296   : > { %1455 = vmatpush.msrb.mxu1 %v1276_v30  ;;  %1495 = vmatpush.msra.mxu2 %v1277_v22  ;;  %v1375_v43 = vpop.permute.xlu1 %1374  ;;  %v1217_v29 = vsel %vm554_vm1, %v3089_v32, %v1215_v58  ;;  %v2123_v32 = vld [vmem:[%s3402_s1 + $0x1] ss:$8 sm:$0x3]  ;;  %v1444_v58 = vpop.permute.xlu2 %1443 }
 0x297   : > { %v1197_v46 = vperm.slane %v2123_v32, 1  ;;  %v1233_v18 = vmul.f32 %v1227_v59, %v1217_v29  ;;  %v1380_v3 = vsel %vm857_vm3, %v3085_v27, %v1375_v43  ;;  %v1196_v2 = vperm.slane %v2123_v32, 0  ;;  %v1710_v29 = vld [vmem:[%s3408_s7] sm:$0xff]  ;;  %v2140_v32 = vld [vmem:[%s3402_s1 + $0x10] ss:$8 sm:$0x3] }
 0x298   : > { %1456 = vmatpush.msrb.mxu1 %v1274_v8  ;;  %1496 = vmatpush.msra.mxu2 %v1275_v26  ;;  %v1394_v61 = vmul.f32 %v1390_v54, %v1380_v3  ;;  %v1386_v7 = vsel %vm857_vm3, %v1375_v43, 0.0 }
 0x299   : > { %v1203_v14 = vmul.f32 %v1197_v46, %v1187_v11  ;;  %v1202_v27 = vmul.f32 %v1196_v2, %v1193_v50  ;;  %v1201_v57 = vmul.f32 %v1197_v46, %v1186_v0  ;;  %v1200_v10 = vmul.f32 %v1196_v2, %v1192_v48  ;;  %v2139_v46 = vld [vmem:[%s3402_s1 + $0x7] ss:$8 sm:$0x3]  ;;  %v2138_v11 = vld [vmem:[%s3402_s1 + $0x6] ss:$8 sm:$0x3] }
 0x29a   : > { %1457 = vmatpush.msrb.mxu1 %v1262_v49  ;;  %1497 = vmatpush.msra.mxu2 %v1263_v47  ;;  %v1395_v24 = vmul.f32 %v1391_v6, %v1386_v7  ;;  %v1665_v50 = vperm.slane %v2139_v46, 0  ;;  %v1648_v2 = vperm.slane %v2138_v11, 1 }
 0x29c   : > { %1458 = vmatpush.msrb.mxu1 %v1260_v9  ;;  %1498 = vmatpush.msra.mxu2 %v1261_v51 }
 0x29d   : > { %v1379_v1 = vpop.permute.xlu0 %1378 }
 0x29e   : > { %v1381_v45 = vsel %vm857_vm3, %v3093_v34, %v1379_v1  ;;  %1499 = vmatpush.msra.mxu2 %v1233_v18  ;;  %v1153_v16 = vpop.permute.xlu1 %1152  ;;  %1459 = vmatpush.msrb.mxu1 %v1232_v62  ;;  %v1387_v34 = vsel %vm857_vm3, %v1379_v1, 0.0  ;;  %v1683_v18 = vperm.slane %v2140_v32, 0  ;;  %v1684_v62 = vperm.slane %v2140_v32, 1 }
 0x29f   : > { %v1396_v4 = vmul.f32 %v1390_v54, %v1381_v45  ;;  %v1157_v63 = vsel %vm443_vm5, %v1153_v16, %v1155_v60  ;;  %v1163_v13 = vsel %vm443_vm5, 0.0, %v1153_v16  ;;  %v1397_v17 = vmul.f32 %v1391_v6, %v1387_v34  ;;  %v2137_v60 = vld [vmem:[%s3402_s1 + $0x5] ss:$8 sm:$0x3] }
 0x2a0   : > { %1460 = vmatpush.msrb.mxu1 %v1230_v35  ;;  %1500 = vmatpush.msra.mxu2 %v1231_v55  ;;  %v1173_v38 = vmul.f32 %v1167_v5, %v1157_v63  ;;  %v1172_v21 = vmul.f32 %v1166_v12, %v1163_v13  ;;  %v1666_v1 = vperm.slane %v2139_v46, 1  ;;  %v1647_v16 = vperm.slane %v2138_v11, 0  ;;  %v2136_v63 = vld [vmem:[%s3402_s1 + $0x4] ss:$8 sm:$0x3] }
 0x2a1   : > { %1483 = vmatpush.msrb.mxu3 %v1396_v4  ;;  %v1630_v6 = vperm.slane %v2137_v60, 1  ;;  %v2135_v13 = vld [vmem:[%s3402_s1 + $0x3] ss:$8 sm:$0x3]  ;;  %v1612_v7 = vperm.slane %v2136_v63, 1 }
 0x2a2   : > { %1461 = vmatpush.msrb.mxu1 %v1202_v27  ;;  %1501 = vmatpush.msra.mxu2 %v1203_v14 }
 0x2a3   : > { %1484 = vmatpush.msrb.mxu3 %v1394_v61 }
 0x2a4   : > { %1462 = vmatpush.msrb.mxu1 %v1200_v10  ;;  %1502 = vmatpush.msra.mxu2 %v1201_v57  ;;  %v1629_v57 = vperm.slane %v2137_v60, 0 }
 0x2a5   : > { %2131 = vmatmul.msk.f32.vlgmr.msrb.gmra.mxu3 %vm498_vm2, %v1403_v56  ;;  %v1149_v20 = vpop.permute.xlu0 %1148 }
 0x2a6   : > { %1523 = vmatpush.msra.mxu3 %v1397_v17  ;;  %v1162_v52 = vsel %vm443_vm5, 0.0, %v1149_v20  ;;  %1503 = vmatpush.msra.mxu2 %v1173_v38  ;;  %v1151_v19 = vpop.permute.xlu1 %1150  ;;  %v2134_v17 = vld [vmem:[%s3402_s1 + $0x2] ss:$8 sm:$0x3] }
 0x2a7   : > { %v1156_v30 = vsel %vm443_vm5, %v1149_v20, %v1151_v19  ;;  %1463 = vmatpush.msrb.mxu1 %v1172_v21  ;;  %v1170_v22 = vmul.f32 %v1166_v12, %v1162_v52  ;;  %v1602_v52 = vperm.slane %v2135_v13, 1 }
 0x2a8   : > { %v1171_v31 = vmul.f32 %v1167_v5, %v1156_v30  ;;  %1524 = vmatpush.msra.mxu3 %v1395_v24  ;;  %v1601_v24 = vperm.slane %v2135_v13, 0 }
 0x2a9   : > { %1464 = vmatpush.msrb.mxu1 %v1170_v22 }
 0x2aa   : > { %1504 = vmatpush.msra.mxu2 %v1171_v31  ;;  %1465 = vmatmul.f32.vlgmr.msrb.gmra.mxu1 %v1402_v33  ;;  %v2133_v31 = vld [vmem:[%s3402_s1 + $0x1] ss:$8 sm:$0x3] }
 0x2ab   : > { %1505 = vmatmul.f32.vlgmr.msra.gmra.mxu2 %v1402_v33 }
 0x2ad   : > { %2132 = vmatmul.msk.f32.vlgmr.msra.gmra.mxu3 %vm498_vm2, %v1403_v56  ;;  %v1611_v56 = vperm.slane %v2136_v63, 0 }
 0x327   : > { %v1466_v15 = vpop.f32.mrf.mxu1 }
 0x328   : > { %v1467_v40 = vadd.f32 %v1466_v15, %v1444_v58  ;;  %v1486_v41 = vpop.f32.mrf.mxu3  ;;  %v1584_v15 = vperm.slane %v2134_v17, 1 }
 0x32a   : > { %v1487_v43 = vadd.f32 %v1486_v41, %v1467_v40 }
 0x32c   : > { %vm1529_vm13 = vcmp.ge.f32.partialorder %v1487_v43, 0.0  ;;  %v1531_v8 = vmul.f32 0.2, %v1487_v43 }
 0x32e   : > { %v3185_v26 = vsel %vm1529_vm13, %v1487_v43, %v1531_v8  ;;  %v1506_v23 = vpop.f32.mrf.mxu2  ;;  %v1545_v8 = vld [vmem:[%s3402_s1] ss:$8 sm:$0x3] }
 0x32f   : > { %v1507_v44 = vadd.f32 %v1506_v23, %v1444_v58  ;;  %1591 = vrot.lane.b32.xlu0 %v3185_v26, %s2411_s2  ;;  %1655 = vrot.lane.b32.xlu2 %v3185_v26, %s2413_s19  ;;  %v1583_v58 = vperm.slane %v2134_v17, 0  ;;  %v1615_v40 = vmul.f32 %v1611_v56, %v3185_v26 }
 0x330   : > { %v1526_v42 = vpop.f32.mrf.mxu3  ;;  %1673 = vrot.lane.b32.xlu1 %v3185_v26, %s2415_s25 }
 0x331   : > { %v1527_v47 = vadd.f32 %v1526_v42, %v1507_v44 }
 0x333   : > { %v1532_v49 = vmul.f32 0.2, %v1527_v47  ;;  %vm1530_vm14 = vcmp.ge.f32.partialorder %v1527_v47, 0.0 }
 0x335   : > { %v3193_v37 = vsel %vm1530_vm14, %v1527_v47, %v1532_v49  ;;  %v1565_v49 = vperm.slane %v2133_v31, 0 }
 0x336   : > { %v1616_v41 = vmul.f32 %v1612_v7, %v3193_v37 }
 0x337   : > { %1573 = vrot.lane.b32.xlu0 %v3185_v26, %s2412_s4  ;;  %1637 = vrot.lane.b32.xlu2 %v3185_v26, %s2416_s22 }
 0x338   : > { %1657 = vrot.lane.b32.xlu1 %v3193_v37, %s2413_s19 }
 0x33f   : > { %1675 = vrot.lane.b32.xlu0 %v3193_v37, %s2415_s25  ;;  %1639 = vrot.lane.b32.xlu2 %v3193_v37, %s2416_s22 }
 0x340   : > { %1593 = vrot.lane.b32.xlu1 %v3193_v37, %s2411_s2 }
 0x347   : > { %1621 = vrot.lane.b32.xlu0 %v3193_v37, %s2418_s11  ;;  %1619 = vrot.lane.b32.xlu2 %v3185_v26, %s2418_s11 }
 0x348   : > { %1575 = vrot.lane.b32.xlu1 %v3193_v37, %s2412_s4 }
 0x34f   : > { %1555 = vrot.lane.b32.xlu0 %v3185_v26, %s2414_s24  ;;  %1537 = vrot.lane.b32.xlu2 %v3185_v26, %s2417_s30 }
 0x350   : > { %1557 = vrot.lane.b32.xlu1 %v3193_v37, %s2414_s24 }
 0x357   : > { %1539 = vrot.lane.b32.xlu0 %v3193_v37, %s2417_s30 }
 0x358   : > { %1713 = vperm.xlu1 %2240, %v1710_v29   ;;  %v1566_v29 = vperm.slane %v2133_v31, 1 }
 0x389   : > { %v1656_v36 = vpop.permute.xlu2 %1655 }
 0x391   : > { %v1638_v39 = vpop.permute.xlu2 %1637 }
 0x399   : > { %v1640_v53 = vpop.permute.xlu2 %1639 }
 0x39a   : > { %v1641_v4 = vsel %vm745_vm6, %v1638_v39, %v1640_v53  ;;  %v1644_v14 = vsel %vm745_vm6, %v1640_v53, 0.0  ;;  %v1547_v39 = vperm.slane %v1545_v8, 0 }
 0x39b   : > { %v1651_v61 = vmul.f32 %v1647_v16, %v1641_v4  ;;  %v1652_v12 = vmul.f32 %v1648_v2, %v1644_v14 }
 0x3a1   : > { %v1592_v51 = vpop.permute.xlu0 %1591  ;;  %v1620_v5 = vpop.permute.xlu2 %1619 }
 0x3a2   : > { %v1674_v59 = vpop.permute.xlu1 %1673  ;;  %v1598_v22 = vsel %vm610_vm0, 0.0, %v1592_v51 }
 0x3a3   : > { %v1605_v44 = vmul.f32 %v1601_v24, %v1598_v22 }
 0x3a9   : > { %v1574_v25 = vpop.permute.xlu0 %1573  ;;  %v1538_v42 = vpop.permute.xlu2 %1537 }
 0x3aa   : > { %v1658_v9 = vpop.permute.xlu1 %1657  ;;  %v1580_v43 = vsel %vm554_vm1, 0.0, %v1574_v25  ;;  %v1544_v37 = vsel %vm443_vm5, 0.0, %v1538_v42 }
 0x3ab   : > { %v1659_v35 = vsel %vm801_vm4, %v1656_v36, %v1658_v9  ;;  %v1662_v54 = vsel %vm801_vm4, %v1658_v9, 0.0  ;;  %v1587_v36 = vmul.f32 %v1583_v58, %v1580_v43  ;;  %v1551_v46 = vmul.f32 %v1547_v39, %v1544_v37 }
 0x3ac   : > { %v1669_v27 = vmul.f32 %v1665_v50, %v1659_v35  ;;  %v1670_v34 = vmul.f32 %v1666_v1, %v1662_v54 }
 0x3b1   : > { %v1676_v28 = vpop.permute.xlu0 %1675 }
 0x3b2   : > { %v1677_v55 = vsel %vm857_vm3, %v1674_v59, %v1676_v28  ;;  %v1680_v3 = vsel %vm857_vm3, %v1676_v28, 0.0  ;;  %v1594_v45 = vpop.permute.xlu1 %1593 }
 0x3b3   : > { %v1687_v48 = vmul.f32 %v1683_v18, %v1677_v55  ;;  %v1688_v0 = vmul.f32 %v1684_v62, %v1680_v3  ;;  %v1595_v33 = vsel %vm610_vm0, %v1592_v51, %v1594_v45  ;;  %v1691_v18 = vld [vmem:[%s3407_s6] sm:$0xff]  ;;  %v1548_v62 = vperm.slane %v1545_v8, 1 }
 0x3b4   : > { %v1606_v47 = vmul.f32 %v1602_v52, %v1595_v33  ;;  %v2146_v8 = vld [vmem:[%s3402_s1 + $0x4] ss:$8 sm:$0x3] }
 0x3b5   : > { %1727 = vmatpush.msra.mxu0 %v1687_v48  ;;  %1747 = vmatpush.msrb.mxu3 %v1688_v0  ;;  %v1842_v39 = vperm.slane %v2146_v8, 0 }
 0x3b7   : > { %1728 = vmatpush.msra.mxu0 %v1669_v27  ;;  %1748 = vmatpush.msrb.mxu3 %v1670_v34  ;;  %v1941_v27 = vld [vmem:[%s3410_s9] sm:$0xff] }
 0x3b9   : > { %v1622_v10 = vpop.permute.xlu0 %1621  ;;  %1729 = vmatpush.msra.mxu0 %v1651_v61  ;;  %1749 = vmatpush.msrb.mxu3 %v1652_v12  ;;  %v2150_v12 = vld [vmem:[%s3402_s1 + $0x10] ss:$8 sm:$0x3] }
 0x3ba   : > { %v1623_v38 = vsel %vm689_vm7, %v1620_v5, %v1622_v10  ;;  %v1626_v20 = vsel %vm689_vm7, %v1622_v10, 0.0  ;;  %v1576_v21 = vpop.permute.xlu1 %1575  ;;  %v1915_v13 = vperm.slane %v2150_v12, 1  ;;  %v2148_v10 = vld [vmem:[%s3402_s1 + $0x6] ss:$8 sm:$0x3] }
 0x3bb   : > { %v1633_v19 = vmul.f32 %v1629_v57, %v1623_v38  ;;  %v1634_v30 = vmul.f32 %v1630_v6, %v1626_v20  ;;  %v1577_v23 = vsel %vm554_vm1, %v1574_v25, %v1576_v21  ;;  %v2149_v57 = vld [vmem:[%s3402_s1 + $0x7] ss:$8 sm:$0x3]  ;;  %v1914_v6 = vperm.slane %v2150_v12, 0 }
 0x3bc   : > { %v1588_v26 = vmul.f32 %v1584_v15, %v1577_v23  ;;  %v1896_v56 = vperm.slane %v2149_v57, 0  ;;  %v1897_v7 = vperm.slane %v2149_v57, 1  ;;  %v1878_v22 = vperm.slane %v2148_v10, 0  ;;  %v2147_v15 = vld [vmem:[%s3402_s1 + $0x5] ss:$8 sm:$0x3] }
 0x3bd   : > { %1730 = vmatpush.msra.mxu0 %v1633_v19  ;;  %1750 = vmatpush.msrb.mxu3 %v1634_v30  ;;  %v1879_v33 = vperm.slane %v2148_v10, 1 }
 0x3bf   : > { %1731 = vmatpush.msra.mxu0 %v1615_v40  ;;  %1751 = vmatpush.msrb.mxu3 %v1616_v41 }
 0x3c1   : > { %v1556_v51 = vpop.permute.xlu0 %1555  ;;  %1752 = vmatpush.msrb.mxu3 %v1606_v47  ;;  %1732 = vmatpush.msra.mxu0 %v1605_v44  ;;  %v1861_v47 = vperm.slane %v2147_v15, 1 }
 0x3c2   : > { %v1562_v59 = vsel %vm498_vm2, 0.0, %v1556_v51  ;;  %v1558_v9 = vpop.permute.xlu1 %1557 }
 0x3c3   : > { %v1569_v53 = vmul.f32 %v1565_v49, %v1562_v59  ;;  %v1559_v25 = vsel %vm498_vm2, %v1556_v51, %v1558_v9  ;;  %1733 = vmatpush.msra.mxu0 %v1587_v36  ;;  %1753 = vmatpush.msrb.mxu3 %v1588_v26  ;;  %v2145_v49 = vld [vmem:[%s3402_s1 + $0x3] ss:$8 sm:$0x3]  ;;  %v1843_v26 = vperm.slane %v2146_v8, 1 }
 0x3c4   : > { %v1570_v32 = vmul.f32 %v1566_v29, %v1559_v25  ;;  %v2144_v51 = vld [vmem:[%s3402_s1 + $0x2] ss:$8 sm:$0x3]  ;;  %v1832_v9 = vperm.slane %v2145_v49, 0 }
 0x3c5   : > { %1734 = vmatpush.msra.mxu0 %v1569_v53  ;;  %v1833_v53 = vperm.slane %v2145_v49, 1 }
 0x3c6   : > { %1754 = vmatpush.msrb.mxu3 %v1570_v32 }
 0x3c7   : > { %1735 = vmatpush.msra.mxu0 %v1551_v46  ;;  %v2143_v46 = vld [vmem:[%s3402_s1 + $0x1] ss:$8 sm:$0x3] }
 0x3c8   : > { %2141 = vmatmul.msk.f32.vlgmr.msra.gmra.mxu0 %vm1716_vm15, %v1691_v18 }
 0x3c9   : > { %v1540_v11 = vpop.permute.xlu0 %1539 }
 0x3ca   : > { %v1541_v50 = vsel %vm443_vm5, %v1538_v42, %v1540_v11  ;;  %v1714_v28 = vpop.permute.xlu1 %1713  ;;  %v1860_v42 = vperm.slane %v2147_v15, 0  ;;  %v1814_v11 = vperm.slane %v2144_v51, 0 }
 0x3cb   : > { %v1552_v1 = vmul.f32 %v1548_v62, %v1541_v50  ;;  %v1815_v50 = vperm.slane %v2144_v51, 1 }
 0x3cd   : > { %1755 = vmatpush.msrb.mxu3 %v1552_v1 }
 0x3ce   : > { %2142 = vmatmul.msk.f32.vlgmr.msrb.gmra.mxu3 %vm1716_vm15, %v1691_v18 }
 0x445   : > { %v1737_v35 = vpop.f32.mrf.mxu0 }
 0x446   : > { %v1738_v54 = vadd.f32 %v1737_v35, %v1714_v28 }
 0x448   : > { %vm1760_vm8 = vcmp.ge.f32.partialorder %v1738_v54, 0.0  ;;  %v1762_v55 = vmul.f32 0.2, %v1738_v54 }
 0x44a   : > { %v3274_v3 = vsel %vm1760_vm8, %v1738_v54, %v1762_v55  ;;  %v1776_v55 = vld [vmem:[%s3402_s1] ss:$8 sm:$0x3] }
 0x44b   : > { %1868 = vrot.lane.b32.xlu0 %v3274_v3, %s2416_s22  ;;  %1886 = vrot.lane.b32.xlu1 %v3274_v3, %s2413_s19  ;;  %v1846_v1 = vmul.f32 %v1842_v39, %v3274_v3 }
 0x44c   : > { %1904 = vrot.lane.b32.xlu2 %v3274_v3, %s2415_s25 }
 0x451   : > { %v1757_v45 = vpop.f32.mrf.mxu3 }
 0x452   : > { %v1758_v16 = vadd.f32 %v1757_v45, %v1714_v28  ;;  %v1796_v45 = vperm.slane %v2143_v46, 0 }
 0x453   : > { %1804 = vrot.lane.b32.xlu0 %v3274_v3, %s2412_s4  ;;  %1822 = vrot.lane.b32.xlu1 %v3274_v3, %s2411_s2 }
 0x454   : > { %1850 = vrot.lane.b32.xlu2 %v3274_v3, %s2418_s11  ;;  %v1763_v2 = vmul.f32 0.2, %v1758_v16  ;;  %vm1761_vm9 = vcmp.ge.f32.partialorder %v1758_v16, 0.0 }
 0x456   : > { %v3288_v48 = vsel %vm1761_vm9, %v1758_v16, %v1763_v2 }
 0x457   : > { %v1847_v28 = vmul.f32 %v1843_v26, %v3288_v48 }
 0x45b   : > { %1906 = vrot.lane.b32.xlu0 %v3288_v48, %s2415_s25  ;;  %1870 = vrot.lane.b32.xlu1 %v3288_v48, %s2416_s22 }
 0x45c   : > { %1786 = vrot.lane.b32.xlu2 %v3274_v3, %s2414_s24 }
 0x463   : > { %1852 = vrot.lane.b32.xlu0 %v3288_v48, %s2418_s11  ;;  %1806 = vrot.lane.b32.xlu1 %v3288_v48, %s2412_s4  ;;  %s2006_s4 = sshll.u32 %s410_s28, 4  ;;  %s2007_s4 = int_to_ptr.vmem [resolvable:$true] %s2006_s4 }
 0x464   : > { %1888 = vrot.lane.b32.xlu2 %v3288_v48, %s2413_s19  ;;  %s2008_s19 = sshll.u32 %s2004_s18, 4  ;;  %s2009_s19 = int_to_ptr.hbm [resolvable:$true] %s2008_s19 }
 0x465   : > { %s2347_s25 = sshra.s32 %s2009_s19, 4  ;;  %s2348_s25 = int_to_ptr.hbm [resolvable:$true] %s2347_s25 }
 0x466   : > { %s2349_s17 = scalar_lea.hbm %s2348_s25, 16  ;;  %p2354_p11 = scmp.lt.s32.totalorder %s2348_s25, %s3411_s10 }
 0x467   : > { %p2350_p1 = scmp.ne.s32.totalorder %s2348_s25, %s2349_s17 }
 0x469   : > { %p2351_p4 = pnand %p2350_p1, %p2541_p3 }
 0x46b   : > { %1788 = vrot.lane.b32.xlu0 %v3288_v48, %s2414_s24  ;;  %1768 = vrot.lane.b32.xlu1 %v3274_v3, %s2417_s30  ;;  %s1993_s24 = scalar_lea.sflag [#allocation5], %s2571_s29  ;;  %p2352_p8 = pneg %p2351_p4 }
 0x46c   : > { %1824 = vrot.lane.b32.xlu2 %v3288_v48, %s2411_s2 }
 0x473   : > { %1944 = vperm.xlu0 %2242, %v1941_v27   ;;  %v1778_v27 = vperm.slane %v1776_v55, 0 }
 0x474   : > { %1770 = vrot.lane.b32.xlu2 %v3288_v48, %s2417_s30  ;;  %s2353_s30 = scalar_lea.hbm %s3411_s10, 32 }
 0x475   : > { %p2355_p2 = scmp.lt.s32.totalorder %s2353_s30, %s2349_s17 }
 0x477   : > { %p2356_p9 = por %p2355_p2, %p2354_p11 }
 0x479   : > { %p2357_p10 = pnand %p2356_p9, %p2352_p8 }
 0x4a6   : > { %v1905_v0 = vpop.permute.xlu2 %1904 }
 0x4ae   : > { %v1851_v4 = vpop.permute.xlu2 %1850 }
 0x4b6   : > { %v3310_v5 = vpop.permute.xlu2 %1786 }
 0x4bd   : > { %v1869_v14 = vpop.permute.xlu0 %1868  ;;  %v1887_v60 = vpop.permute.xlu1 %1886 }
 0x4be   : > { %v1889_v61 = vpop.permute.xlu2 %1888 }
 0x4bf   : > { %v1890_v20 = vsel %vm801_vm4, %v1887_v60, %v1889_v61  ;;  %v1893_v21 = vsel %vm801_vm4, %v1889_v61, 0.0 }
 0x4c0   : > { %v1900_v40 = vmul.f32 %v1896_v56, %v1890_v20  ;;  %v1901_v41 = vmul.f32 %v1897_v7, %v1893_v21  ;;  %v1922_v7 = vld [vmem:[%s3409_s8] sm:$0xff] }
 0x4c5   : > { %v1805_v34 = vpop.permute.xlu0 %1804  ;;  %v1823_v63 = vpop.permute.xlu1 %1822 }
 0x4c6   : > { %v1825_v43 = vpop.permute.xlu2 %1824  ;;  %v1829_v18 = vsel %vm610_vm0, 0.0, %v1823_v63  ;;  %v1811_v35 = vsel %vm554_vm1, 0.0, %v1805_v34 }
 0x4c7   : > { %v1826_v62 = vsel %vm610_vm0, %v1823_v63, %v1825_v43  ;;  %v1836_v16 = vmul.f32 %v1832_v9, %v1829_v18  ;;  %v1779_v63 = vperm.slane %v1776_v55, 1 }
 0x4c8   : > { %v1837_v2 = vmul.f32 %v1833_v53, %v1826_v62 }
 0x4cd   : > { %v1907_v17 = vpop.permute.xlu0 %1906  ;;  %v1871_v38 = vpop.permute.xlu1 %1870 }
 0x4ce   : > { %v1908_v24 = vsel %vm857_vm3, %v1905_v0, %v1907_v17  ;;  %v1911_v52 = vsel %vm857_vm3, %v1907_v17, 0.0  ;;  %v1872_v31 = vsel %vm745_vm6, %v1869_v14, %v1871_v38  ;;  %v1875_v58 = vsel %vm745_vm6, %v1871_v38, 0.0  ;;  %v1771_v3 = vpop.permute.xlu2 %1770 }
 0x4cf   : > { %v1918_v19 = vmul.f32 %v1914_v6, %v1908_v24  ;;  %v1919_v30 = vmul.f32 %v1915_v13, %v1911_v52  ;;  %v1882_v23 = vmul.f32 %v1878_v22, %v1872_v31  ;;  %v1883_v44 = vmul.f32 %v1879_v33, %v1875_v58 }
 0x4d0   : > { %v1797_v0 = vperm.slane %v2143_v46, 1  ;;  %v1818_v14 = vmul.f32 %v1814_v11, %v1811_v35 }
 0x4d1   : > { %1957 = vmatpush.msra.mxu1 %v1918_v19  ;;  %1977 = vmatpush.msrb.mxu0 %v1919_v30 }
 0x4d3   : > { %1958 = vmatpush.msra.mxu1 %v1900_v40  ;;  %1978 = vmatpush.msrb.mxu0 %v1901_v41 }
 0x4d5   : > { %v1853_v29 = vpop.permute.xlu0 %1852  ;;  %v1807_v36 = vpop.permute.xlu1 %1806  ;;  %1959 = vmatpush.msra.mxu1 %v1882_v23  ;;  %1979 = vmatpush.msrb.mxu0 %v1883_v44 }
 0x4d6   : > { %v1854_v37 = vsel %vm689_vm7, %v1851_v4, %v1853_v29  ;;  %v1857_v59 = vsel %vm689_vm7, %v1853_v29, 0.0  ;;  %v1808_v54 = vsel %vm554_vm1, %v1805_v34, %v1807_v36  ;;  %v1793_v4 = vsel %vm498_vm2, 0.0, %v3310_v5 }
 0x4d7   : > { %v1864_v25 = vmul.f32 %v1860_v42, %v1854_v37  ;;  %v1865_v32 = vmul.f32 %v1861_v47, %v1857_v59  ;;  %v1819_v48 = vmul.f32 %v1815_v50, %v1808_v54  ;;  %v1800_v6 = vmul.f32 %v1796_v45, %v1793_v4 }
 0x4d9   : > { %1960 = vmatpush.msra.mxu1 %v1864_v25  ;;  %1980 = vmatpush.msrb.mxu0 %v1865_v32 }
 0x4db   : > { %1961 = vmatpush.msra.mxu1 %v1846_v1  ;;  %1981 = vmatpush.msrb.mxu0 %v1847_v28 }
 0x4dd   : > { %v1789_v60 = vpop.permute.xlu0 %1788  ;;  %v1769_v34 = vpop.permute.xlu1 %1768  ;;  %1962 = vmatpush.msra.mxu1 %v1836_v16  ;;  %1982 = vmatpush.msrb.mxu0 %v1837_v2 }
 0x4de   : > { %v1790_v61 = vsel %vm498_vm2, %v3310_v5, %v1789_v60  ;;  %v1772_v12 = vsel %vm443_vm5, %v1769_v34, %v1771_v3  ;;  %v1775_v57 = vsel %vm443_vm5, 0.0, %v1769_v34 }
 0x4df   : > { %v1801_v13 = vmul.f32 %v1797_v0, %v1790_v61  ;;  %1963 = vmatpush.msra.mxu1 %v1818_v14  ;;  %1983 = vmatpush.msrb.mxu0 %v1819_v48  ;;  %v1782_v10 = vmul.f32 %v1778_v27, %v1775_v57  ;;  %v1783_v56 = vmul.f32 %v1779_v63, %v1772_v12 }
 0x4e1   : > { %1964 = vmatpush.msra.mxu1 %v1800_v6  ;;  %1984 = vmatpush.msrb.mxu0 %v1801_v13 }
 0x4e3   : > { %1965 = vmatpush.msra.mxu1 %v1782_v10  ;;  %1985 = vmatpush.msrb.mxu0 %v1783_v56 }
 0x4e4   : > { %2151 = vmatmul.msk.f32.vlgmr.msra.gmra.mxu1 %vm1716_vm15, %v1922_v7  ;;  %2152 = vmatmul.msk.f32.vlgmr.msrb.gmra.mxu0 %vm1716_vm15, %v1922_v7 }
 0x4e5   : > { %v1945_v5 = vpop.permute.xlu0 %1944 }
 0x561   : > { %v1967_v17 = vpop.f32.mrf.mxu1  ;;  %v1987_v38 = vpop.f32.mrf.mxu0 }
 0x562   : > { %v1968_v20 = vadd.f32 %v1967_v17, %v1945_v5  ;;  %v1988_v21 = vadd.f32 %v1987_v38, %v1945_v5 }
 0x564   : > { %1990 = vst [vmem:[%s410_s28] sm:$0xff] %v1968_v20 }
 0x565   : > { %1991 = vst [vmem:[%s410_s28 + $0x8] sm:$0xff] %v1988_v21 }
 0x566   : > { %2360 = shalt.err (!%p2357_p10)
}
 0x567   : > { %2170 = dma.vmem_to_hbm [thread:$0]  (%p2541_p3), %s2007_s4, 256, %s2009_s19, %s1993_s24  }
 0x568 PF: > { %s2020_s29 = sand.u32 1, %s2391_s13   ;;  %p3424_p12 = scmp.ge.s32.totalorder %s2403_s16, 2 }
 0x569   : > { %s2021_s15 = scalar_lea.sflag [#allocation5], %s2020_s29 }
 0x56a   : > { %p2184_p13 = pnand %p3424_p12, %p2510_p6 }
 0x56c   : > { %p2185_p0 = pneg %p2184_p13 }
 0x56e   : > { %2386 = dma.done.wait (%p2185_p0), %s2021_s15, 256  }
 0x56f   : > { %2388 = vsyncadd (%p2185_p0), %s2021_s15, 4294967040  ;;  %s3425_s12 = sld [smem:[#allocation13_spill]]  ;;  %p24_p5 = scmp.ge.s32.totalorder %s2531_s21, 4  }
 0x570   : > { %s3426_s15 = sld [smem:[#allocation14_spill]]  ;;  %s3427_s13 = smov %s2395_s14 }
 0x571   : > { %s3429_s16 = smov %s2531_s21  ;;  %26 = sbr.rel (!%p24_p5) target bundleno = 9 (0x9), region = 121 }
 0x575   : > { %s3428_s14 = smov %s3425_s12 }
 0x576   :  { %2027 = vsyncpa [#allocation4], 1 }
 0x577   :  { %2029 = vsyncpa [#allocation4 + $0x1], 1 }
 0x578   :  { %2030 = vsyncpa [#allocation7], 1 }
 0x579   :  { %2031 = vsyncpa [#allocation5], 1 }
 0x57a   :  { %2033 = vsyncpa [#allocation5 + $0x1], 1 }

</bundles_post_ra>
